<compile_context>
chip_gen: v6e
topology: v6e:2x2x1
jax: 0.10.0
libtpu: 0.0.40
codegen_flags: <defaults>
</compile_context>

<pallas_src>
import jax
import jax.numpy as jnp
from jax.experimental import pallas as pl
from jax.experimental.pallas import tpu as pltpu

BACKBONE_OUT_FEATURES = {"EfficientNet_B0": 1280}
MODEL_TYPE = "EfficientNet_B0"
IN_FEATURES = BACKBONE_OUT_FEATURES[MODEL_TYPE]   # head in_features


def _vmem_capacity_bytes():
    """Physical VMEM per core; falls back to the v5e/v6e value."""
    try:
        cap = int(pltpu.get_tpu_info().vmem_capacity_bytes)
        if cap > 0:
            return cap
    except Exception:
        pass
    return 128 << 20


def _fused_pool_head_kernel(x_ref, w_ref, o_ref):
    """x_ref: (TN, C*H*W) feature tile (any float dtype);
    w_ref: (1, C*H*W) f32 pool-fused head weight (sublane-broadcast is free);
    o_ref: (TN, 1) f32 logits (bias added outside).

    Pure VPU weighted-sum: ~2 VALU ops per input vreg, reduction accumulates
    in f32 (multiply with the f32 weight promotes bf16 inputs)."""
    o_ref[...] = jnp.sum(x_ref[...] * w_ref[...], axis=-1, keepdims=True)


def make_fused_head_weight(head_w, hw):
    """Fold AdaptiveAvgPool2d((1,1)) + Flatten + Linear into one weighted sum:
    sum_s x[n, c*HW + s] * (w[c] / HW) == (mean_{H,W}(x) @ w.T)[n].
    Kept in f32; build once per model (constant-folds under jit)."""
    c = head_w.shape[-1]
    w_rep = jnp.repeat(head_w.reshape(c).astype(jnp.float32), hw) / jnp.float32(hw)
    return w_rep.reshape(1, c * hw)          # lane-major row, f32


def spoofing_classifier_forward(feat_nchw, head_w, head_b, *, tn=256):
    """feat_nchw: (N, C, H, W) backbone feature map (PyTorch NCHW layout),
    f32 or bf16.  head_w: (1, C) Linear weight; head_b: (1,) bias.
    Returns logits of shape (N, 1) (f32), matching the torch module."""
    N, C, H, W = feat_nchw.shape
    assert C == IN_FEATURES
    hw = H * W
    chw = C * hw

    # Contiguous flatten — no HBM transpose/copy of the feature map.
    x = feat_nchw.reshape(N, chw)
    w_rep = make_fused_head_weight(head_w, hw)

    # Generation-aware VMEM budgets.
    cap = _vmem_capacity_bytes()                    # 128 MiB v5e/v6e, 64 MiB v7x
    input_budget = min(cap // 2, 64 << 20)          # double-buffered input tiles
    vmem_limit = int(min(cap - (8 << 20), input_budget + (16 << 20)))

    # Batch tile: largest multiple of 8 whose double-buffered input tiles fit
    # the budget.  If the whole batch fits, use a single full-extent block.
    itemsize = jnp.dtype(feat_nchw.dtype).itemsize
    tn_cap = max(8, (input_budget // (2 * chw * itemsize)) // 8 * 8)
    tn = int(min(tn, tn_cap))
    tn_eff = N if N <= tn else tn                   # full dim, or multiple of 8
    grid = (pl.cdiv(N, tn_eff),)                    # uneven tail handled by Pallas

    out = pl.pallas_call(
        _fused_pool_head_kernel,
        out_shape=jax.ShapeDtypeStruct((N, 1), jnp.float32),
        grid=grid,
        in_specs=[
            pl.BlockSpec((tn_eff, chw), lambda i: (i, 0)),   # batch tile
            pl.BlockSpec((1, chw), lambda i: (0, 0)),        # fused weight row
        ],
        out_specs=pl.BlockSpec((tn_eff, 1), lambda i: (i, 0)),
        compiler_params=pltpu.CompilerParams(
            dimension_semantics=("parallel",),               # megacore shard
            vmem_limit_bytes=vmem_limit,
        ),
    )(x, w_rep)

    # Bias add on the tiny (N, 1) logits outside the kernel.
    return out + head_b.reshape(1, 1).astype(jnp.float32)


if __name__ == "__main__":
    key = jax.random.PRNGKey(0)
    k_feat, k_w, k_b = jax.random.split(key, 3)

    # Small shapes consistent with the module: batch=2, EfficientNet_B0 feature
    # map with C=1280 channels and a small 4x4 spatial grid.
    N, C, H, W = 2, IN_FEATURES, 4, 4
    feat = jax.random.normal(k_feat, (N, C, H, W), dtype=jnp.float32)

    # Deterministic head params, same init scheme as torch.nn.Linear:
    # U(-1/sqrt(in_features), 1/sqrt(in_features)).
    bound = 1.0 / jnp.sqrt(jnp.float32(C))
    head_w = jax.random.uniform(k_w, (1, C), jnp.float32, -bound, bound)
    head_b = jax.random.uniform(k_b, (1,), jnp.float32, -bound, bound)

    out = spoofing_classifier_forward(feat, head_w, head_b)
    out = jax.block_until_ready(out)

    # Pure-JAX reference of the same forward semantics
    # (AdaptiveAvgPool2d((1,1)) + Flatten + Linear).
    ref_pooled = jnp.mean(feat, axis=(2, 3))                 # (N, C)
    ref = ref_pooled @ head_w.T + head_b                     # (N, 1)
    assert out.shape == (N, 1)
    assert jnp.allclose(out, ref, atol=1e-4, rtol=1e-4), (
        float(jnp.max(jnp.abs(out - ref))))

    print("KERNEL_OK")
</pallas_src>

<mosaic_0001>
module attributes {stable_mosaic.version = 11 : i64} {
  func.func @_fused_pool_head_kernel(%arg0: i32, %arg1: memref<2x20480xf32, #tpu.memory_space<vmem>>, %arg2: memref<1x20480xf32, #tpu.memory_space<vmem>>, %arg3: memref<2x1xf32, #tpu.memory_space<vmem>>) attributes {dimension_semantics = [#tpu.dimension_semantics<parallel>], iteration_bounds = array<i64: 1>, scalar_prefetch = 0 : i64, scratch_operands = 0 : i64, tpu.core_type = #tpu.core_type<tc>, window_params = [{transform_indices = @transform_0, window_bounds = array<i64: 2, 20480>}, {pipeline_mode = #tpu.pipeline_mode<synchronous>, transform_indices = @transform_1, window_bounds = array<i64: 1, 20480>}, {transform_indices = @transform_2, window_bounds = array<i64: 2, 1>}]} {
    %c0 = arith.constant 0 : index
    %c0_0 = arith.constant 0 : index
    %0 = vector.load %arg1[%c0, %c0_0] : memref<2x20480xf32, #tpu.memory_space<vmem>>, vector<2x20480xf32>
    %c0_1 = arith.constant 0 : index
    %c0_2 = arith.constant 0 : index
    %1 = vector.load %arg2[%c0_1, %c0_2] : memref<1x20480xf32, #tpu.memory_space<vmem>>, vector<1x20480xf32>
    %2 = vector.broadcast %1 : vector<1x20480xf32> to vector<2x20480xf32>
    %3 = arith.mulf %0, %2 : vector<2x20480xf32>
    %cst = arith.constant dense<0.000000e+00> : vector<2xf32>
    %4 = vector.multi_reduction <add>, %3, %cst [1] : vector<2x20480xf32> to vector<2xf32>
    %5 = vector.shape_cast %4 : vector<2xf32> to vector<2x1xf32>
    %c0_3 = arith.constant 0 : index
    %c0_4 = arith.constant 0 : index
    %6 = vector.load %arg3[%c0_3, %c0_4] : memref<2x1xf32, #tpu.memory_space<vmem>>, vector<2x1xf32>
    tpu.vector_store %arg3[%c0_3, %c0_4], %5 {strides = array<i32>} : memref<2x1xf32, #tpu.memory_space<vmem>>, vector<2x1xf32>,
    return
  }
  func.func @transform_0(%arg0: i32) -> (i32, i32) {
    %c0_i32 = arith.constant 0 : i32
    %c0_i32_0 = arith.constant 0 : i32
    return %arg0, %c0_i32 : i32, i32
  }
  func.func @transform_1(%arg0: i32) -> (i32, i32) {
    %c0_i32 = arith.constant 0 : i32
    %c0_i32_0 = arith.constant 0 : i32
    %c0_i32_1 = arith.constant 0 : i32
    return %c0_i32, %c0_i32_0 : i32, i32
  }
  func.func @transform_2(%arg0: i32) -> (i32, i32) {
    %c0_i32 = arith.constant 0 : i32
    %c0_i32_0 = arith.constant 0 : i32
    return %arg0, %c0_i32 : i32, i32
  }
}

</mosaic_0001>

<bundles_post_ra>
// kernel: tpu_custom_call.1
= control target key start
LH: loop header
LB: loop body
LE: loop exit
PB: predicated region body
PF: predicated region fallthrough
CT: control target
= control target key end

     0   :  { %7 = vsyncpa [#allocation3], 0  ;;  %s3937_s0 = inlined_call_operand.hbm [shape: f32[2,20480], index: 0, kind: input, shape index: {}]   ;;  %s3938_s1 = inlined_call_operand.hbm [shape: f32[1,20480], index: 1, kind: input, shape index: {}]   ;;  %s3939_s2 = inlined_call_operand.vmem [shape: f32[2,1], index: 2, kind: output, shape index: {}]  }
   0x1   :  { %8 = vsyncpa [#allocation5], 0  ;;  %s2772_s9 = smov [#allocation2]   ;;  %s2773_s11 = smov [#allocation4]  }
   0x2   :  { %s15_s10 = sshll.u32 %s2772_s9, 4  ;;  %s25_s12 = sshll.u32 %s2773_s11, 4  ;;  %s16_s10 = int_to_ptr.vmem [resolvable:$true] %s15_s10  ;;  %s26_s12 = int_to_ptr.vmem [resolvable:$true] %s25_s12 }
   0x3   :  { %s2736_s13 = scalar_lea.vmem %s16_s10, 5120  ;;  %p2741_p1 = scmp.lt.s32.totalorder %s16_s10, %s16_s10 }
   0x4   :  { %p2737_p0 = scmp.ne.s32.totalorder %s16_s10, %s2736_s13  ;;  %p2742_p2 = scmp.lt.s32.totalorder %s2736_s13, %s2736_s13 }
   0x6   :  { %p2743_p3 = por %p2742_p2, %p2741_p1 }
   0x8   :  { %p2744_p4 = pnand %p2743_p3, %p2737_p0 }
   0xa   :  { %2747 = shalt.err (!%p2744_p4)
}
   0xb   :  { %18 = dma.hbm_to_vmem [thread:$0]  %s3937_s0, 5120, %s16_s10, [#allocation3]  }
   0xc   :  { %s2756_s16 = scalar_lea.vmem %s26_s12, 2560  ;;  %p2761_p6 = scmp.lt.s32.totalorder %s26_s12, %s26_s12 }
   0xd   :  { %p2757_p5 = scmp.ne.s32.totalorder %s26_s12, %s2756_s16  ;;  %p2762_p7 = scmp.lt.s32.totalorder %s2756_s16, %s2756_s16 }
   0xf   :  { %p2763_p8 = por %p2762_p7, %p2761_p6 }
  0x11   :  { %p2764_p9 = pnand %p2763_p8, %p2757_p5 }
  0x13   :  { %2767 = shalt.err (!%p2764_p9)
}
  0x14   :  { %28 = dma.hbm_to_vmem [thread:$0]  %s3938_s1, 2560, %s26_s12, [#allocation5]  }
  0x15   :  { %2768 = dma.done.wait [#allocation3], 5120  }
  0x16   :  { %2769 = vsyncadd [#allocation3], 4294962176 }
  0x17   :  { %2770 = dma.done.wait [#allocation5], 2560  }
  0x18   :  { %2771 = vsyncadd [#allocation5], 4294964736  ;;  %v115_v0 = vlaneseq  ;;  %v2774_v1 = vmov 1983009808   ;;  %v2796_v5 = vld [vmem:[#allocation4 + $0x20] sm:$0xff]  ;;  %v2808_v11 = vld [vmem:[#allocation4 + $0x28] sm:$0xff] }
  0x19   :  { %v758_v2 = vunpack.c.l.s4 %v2774_v1  ;;  %v2826_v20 = vld [vmem:[#allocation4 + $0x30] sm:$0xff]  ;;  %v2844_v29 = vld [vmem:[#allocation4 + $0x38] sm:$0xff]  ;;  %v2862_v38 = vld [vmem:[#allocation4 + $0x40] sm:$0xff]  ;;  %vm2395_vm0 = vcmask 1041408   ;;  %vm2717_vm1 = vcmask 1024  }
  0x1a   :  { %v116_v3 = vshrl.u32 %v115_v0, 7  ;;  %v2880_v47 = vld [vmem:[#allocation4 + $0x48] sm:$0xff]  ;;  %v2898_v56 = vld [vmem:[#allocation4 + $0x50] sm:$0xff]  ;;  %v2916_v1 = vld [vmem:[#allocation4 + $0x58] sm:$0xff] }
  0x1b   :  { %v759_v4 = vunpack.c.0.s8 %v758_v2  ;;  %v2934_v59 = vld [vmem:[#allocation4 + $0x60] sm:$0xff]  ;;  %v2952_v60 = vld [vmem:[#allocation4 + $0x68] sm:$0xff]  ;;  %v2970_v57 = vld [vmem:[#allocation4 + $0x70] sm:$0xff] }
  0x1c   :  { %v2798_v6 = vsub.s32 0, %v116_v3  ;;  %v2800_v7 = vsub.s32 1, %v116_v3  ;;  %v2802_v8 = vsub.s32 2, %v116_v3  ;;  %v2804_v9 = vsub.s32 3, %v116_v3  ;;  %v2988_v58 = vld [vmem:[#allocation4 + $0x78] sm:$0xff]  ;;  %v3006_v54 = vld [vmem:[#allocation4 + $0x80] sm:$0xff] }
  0x1d   :  { %v2806_v10 = vsub.s32 4, %v116_v3  ;;  %v2810_v12 = vsub.s32 5, %v116_v3  ;;  %v2812_v13 = vsub.s32 6, %v116_v3  ;;  %v2814_v14 = vsub.s32 7, %v116_v3  ;;  %v3024_v55 = vld [vmem:[#allocation4 + $0x88] sm:$0xff]  ;;  %v3042_v52 = vld [vmem:[#allocation4 + $0x90] sm:$0xff] }
  0x1e   :  { %v2816_v15 = vsub.s32 %v759_v4, %v116_v3  ;;  %v246_v16 = vrot.slane %v2796_v5, %v2798_v6  ;;  %v250_v17 = vrot.slane %v2796_v5, %v2800_v7  ;;  %v254_v18 = vrot.slane %v2796_v5, %v2802_v8  ;;  %v3060_v53 = vld [vmem:[#allocation4 + $0x98] sm:$0xff] }
  0x1f   :  { %v258_v19 = vrot.slane %v2796_v5, %v2804_v9  ;;  %v262_v21 = vrot.slane %v2796_v5, %v2806_v10  ;;  %v266_v22 = vrot.slane %v2796_v5, %v2810_v12  ;;  %v270_v23 = vrot.slane %v2796_v5, %v2812_v13 }
  0x20   :  { %v274_v24 = vrot.slane %v2796_v5, %v2814_v14  ;;  %v278_v25 = vrot.slane %v2808_v11, %v2798_v6  ;;  %v282_v26 = vrot.slane %v2808_v11, %v2800_v7  ;;  %v286_v27 = vrot.slane %v2808_v11, %v2802_v8 }
  0x21   :  { %v290_v28 = vrot.slane %v2808_v11, %v2804_v9  ;;  %v294_v30 = vrot.slane %v2808_v11, %v2806_v10  ;;  %v298_v31 = vrot.slane %v2808_v11, %v2810_v12  ;;  %v302_v32 = vrot.slane %v2808_v11, %v2812_v13 }
  0x22   :  { %v306_v33 = vrot.slane %v2808_v11, %v2814_v14  ;;  %v310_v34 = vrot.slane %v2826_v20, %v2798_v6  ;;  %v314_v35 = vrot.slane %v2826_v20, %v2800_v7  ;;  %v318_v36 = vrot.slane %v2826_v20, %v2802_v8 }
  0x23   :  { %v322_v37 = vrot.slane %v2826_v20, %v2804_v9  ;;  %v326_v39 = vrot.slane %v2826_v20, %v2806_v10  ;;  %v330_v40 = vrot.slane %v2826_v20, %v2810_v12  ;;  %v334_v41 = vrot.slane %v2826_v20, %v2812_v13 }
  0x24   :  { %v338_v42 = vrot.slane %v2826_v20, %v2814_v14  ;;  %v342_v43 = vrot.slane %v2844_v29, %v2798_v6  ;;  %v346_v44 = vrot.slane %v2844_v29, %v2800_v7  ;;  %v350_v45 = vrot.slane %v2844_v29, %v2802_v8 }
  0x25   :  { %v354_v46 = vrot.slane %v2844_v29, %v2804_v9  ;;  %v358_v48 = vrot.slane %v2844_v29, %v2806_v10  ;;  %v362_v49 = vrot.slane %v2844_v29, %v2810_v12  ;;  %v366_v50 = vrot.slane %v2844_v29, %v2812_v13 }
  0x26   :  { %v370_v51 = vrot.slane %v2844_v29, %v2814_v14  ;;  %v714_v63 = vrot.slane %v3042_v52, %v2810_v12  ;;  %v891_v61 = vcombine.low %v246_v16, %v250_v17  ;;  %v738_v0 = vrot.slane %v3060_v53, %v2804_v9 }
  0x27   :  { %v746_v2 = vrot.slane %v3060_v53, %v2810_v12  ;;  %v892_v4 = vcombine.low %v254_v18, %v258_v19  ;;  %v750_v3 = vrot.slane %v3060_v53, %v2812_v13  ;;  %v908_v17 = vcombine.low %v262_v21, %v266_v22 }
  0x28   :  { %v899_v16 = vrot.slane %v891_v61, %v2816_v15  ;;  %v909_v62 = vcombine.low %v270_v23, %v274_v24  ;;  %v754_v18 = vrot.slane %v3060_v53, %v2814_v14  ;;  %v925_v61 = vcombine.low %v278_v25, %v282_v26 }
  0x29   :  { %v906_v19 = vrot.slane %v892_v4, %v2816_v15  ;;  %v926_v5 = vcombine.low %v286_v27, %v290_v28  ;;  %v916_v21 = vrot.slane %v908_v17, %v2816_v15  ;;  %v942_v23 = vcombine.low %v294_v30, %v298_v31 }
  0x2a   :  { %v923_v22 = vrot.slane %v909_v62, %v2816_v15  ;;  %v943_v24 = vcombine.low %v302_v32, %v306_v33  ;;  %v933_v26 = vrot.slane %v925_v61, %v2816_v15  ;;  %v959_v28 = vcombine.low %v310_v34, %v314_v35 }
  0x2b   :  { %v3154_v25 = vcombine.low %v899_v16, %v906_v19  ;;  %v940_v27 = vrot.slane %v926_v5, %v2816_v15  ;;  %v950_v31 = vrot.slane %v942_v23, %v2816_v15  ;;  %v960_v32 = vcombine.low %v318_v36, %v322_v37 }
  0x2c   :  { %v3164_v30 = vcombine.low %v916_v21, %v923_v22  ;;  %v957_v11 = vrot.slane %v943_v24, %v2816_v15  ;;  %v967_v62 = vrot.slane %v959_v28, %v2816_v15  ;;  %v976_v34 = vcombine.low %v326_v39, %v330_v40 }
  0x2d   :  { %v3174_v33 = vcombine.low %v933_v26, %v940_v27  ;;  %v977_v35 = vcombine.low %v334_v41, %v338_v42  ;;  %v974_v36 = vrot.slane %v960_v32, %v2816_v15  ;;  %v993_v37 = vcombine.low %v342_v43, %v346_v44 }
  0x2e   :  { %v3189_v4 = vcombine.low %v950_v31, %v957_v11  ;;  %v994_v39 = vcombine.low %v350_v45, %v354_v46  ;;  %v984_v20 = vrot.slane %v976_v34, %v2816_v15  ;;  %v1010_v41 = vcombine.low %v358_v48, %v362_v49 }
  0x2f   :  { %v991_v40 = vrot.slane %v977_v35, %v2816_v15  ;;  %v1011_v42 = vcombine.low %v366_v50, %v370_v51  ;;  %v3218_v43 = vcombine.low %v967_v62, %v974_v36  ;;  %v1001_v44 = vrot.slane %v993_v37, %v2816_v15 }
  0x30   :  { %v1008_v45 = vrot.slane %v994_v39, %v2816_v15  ;;  %v3940_v46 = vrot.slane %v2862_v38, %v2800_v7  ;;  %v3941_v16 = vrot.slane %v2862_v38, %v2798_v6  ;;  %v1018_v17 = vrot.slane %v1010_v41, %v2816_v15 }
  0x31   :  { %v3228_v49 = vcombine.low %v984_v20, %v991_v40  ;;  %v1025_v29 = vrot.slane %v1011_v42, %v2816_v15  ;;  %v3942_v50 = vrot.slane %v2862_v38, %v2804_v9  ;;  %v3943_v51 = vrot.slane %v2862_v38, %v2802_v8 }
  0x32   :  { %v1027_v48 = vcombine.low %v3941_v16, %v3940_v46  ;;  %v3238_v61 = vcombine.low %v1001_v44, %v1008_v45  ;;  %v3944_v21 = vrot.slane %v2862_v38, %v2810_v12  ;;  %v3945_v22 = vrot.slane %v2862_v38, %v2806_v10 }
  0x33   :  { %v1028_v19 = vcombine.low %v3943_v51, %v3942_v50  ;;  %v3946_v24 = vrot.slane %v2862_v38, %v2814_v14  ;;  %v3947_v26 = vrot.slane %v2862_v38, %v2812_v13  ;;  %v3253_v28 = vcombine.low %v1018_v17, %v1025_v29 }
  0x34   :  { %v1035_v5 = vrot.slane %v1027_v48, %v2816_v15  ;;  %v1044_v23 = vcombine.low %v3945_v22, %v3944_v21  ;;  %v3948_v11 = vrot.slane %v2880_v47, %v2800_v7  ;;  %v3949_v32 = vrot.slane %v2880_v47, %v2798_v6 }
  0x35   :  { %v1045_v27 = vcombine.low %v3947_v26, %v3946_v24  ;;  %v1042_v31 = vrot.slane %v1028_v19, %v2816_v15  ;;  %v3950_v34 = vrot.slane %v2880_v47, %v2804_v9  ;;  %v3951_v35 = vrot.slane %v2880_v47, %v2802_v8 }
  0x36   :  { %v1061_v62 = vcombine.low %v3949_v32, %v3948_v11  ;;  %v1052_v38 = vrot.slane %v1044_v23, %v2816_v15  ;;  %v3952_v39 = vrot.slane %v2880_v47, %v2810_v12  ;;  %v3953_v20 = vrot.slane %v2880_v47, %v2806_v10 }
  0x37   :  { %v1062_v36 = vcombine.low %v3951_v35, %v3950_v34  ;;  %v1059_v37 = vrot.slane %v1045_v27, %v2816_v15  ;;  %v3954_v41 = vrot.slane %v2880_v47, %v2814_v14  ;;  %v3955_v42 = vrot.slane %v2880_v47, %v2812_v13 }
  0x38   :  { %v1078_v40 = vcombine.low %v3953_v20, %v3952_v39  ;;  %v3282_v45 = vcombine.low %v1035_v5, %v1042_v31  ;;  %v1069_v46 = vrot.slane %v1061_v62, %v2816_v15  ;;  %v3956_v48 = vrot.slane %v2898_v56, %v2800_v7 }
  0x39   :  { %v1079_v44 = vcombine.low %v3955_v42, %v3954_v41  ;;  %v1076_v16 = vrot.slane %v1062_v36, %v2816_v15  ;;  %v3957_v17 = vrot.slane %v2898_v56, %v2798_v6  ;;  %v3292_v50 = vcombine.low %v1052_v38, %v1059_v37 }
  0x3a   :  { %v1086_v51 = vrot.slane %v1078_v40, %v2816_v15  ;;  %v3958_v19 = vrot.slane %v2898_v56, %v2804_v9  ;;  %v3959_v5 = vrot.slane %v2898_v56, %v2802_v8  ;;  %v3960_v24 = vrot.slane %v2898_v56, %v2810_v12 }
  0x3b   :  { %v1095_v29 = vcombine.low %v3957_v17, %v3956_v48  ;;  %v1093_v47 = vrot.slane %v1079_v44, %v2816_v15  ;;  %v3302_v22 = vcombine.low %v1069_v46, %v1076_v16  ;;  %v3961_v26 = vrot.slane %v2898_v56, %v2806_v10 }
  0x3c   :  { %v1096_v21 = vcombine.low %v3959_v5, %v3958_v19  ;;  %v3962_v31 = vrot.slane %v2898_v56, %v2814_v14  ;;  %v3963_v11 = vrot.slane %v2898_v56, %v2812_v13  ;;  %v3964_v35 = vrot.slane %v2916_v1, %v2800_v7 }
  0x3d   :  { %v1103_v23 = vrot.slane %v1095_v29, %v2816_v15  ;;  %v1112_v27 = vcombine.low %v3961_v26, %v3960_v24  ;;  %v3317_v62 = vcombine.low %v1086_v51, %v1093_v47  ;;  %v3965_v36 = vrot.slane %v2916_v1, %v2798_v6 }
  0x3e   :  { %v1113_v32 = vcombine.low %v3963_v11, %v3962_v31  ;;  %v1110_v34 = vrot.slane %v1096_v21, %v2816_v15  ;;  %v3966_v37 = vrot.slane %v2916_v1, %v2804_v9  ;;  %v3967_v39 = vrot.slane %v2916_v1, %v2802_v8 }
  0x3f   :  { %v1129_v38 = vcombine.low %v3965_v36, %v3964_v35  ;;  %v1120_v56 = vrot.slane %v1112_v27, %v2816_v15  ;;  %v3968_v41 = vrot.slane %v2916_v1, %v2810_v12  ;;  %v3969_v42 = vrot.slane %v2916_v1, %v2806_v10 }
  0x40   :  { %v1130_v20 = vcombine.low %v3967_v39, %v3966_v37  ;;  %v1127_v40 = vrot.slane %v1113_v32, %v2816_v15  ;;  %v3970_v46 = vrot.slane %v2916_v1, %v2814_v14  ;;  %v3971_v16 = vrot.slane %v2916_v1, %v2812_v13 }
  0x41   :  { %v1146_v44 = vcombine.low %v3969_v42, %v3968_v41  ;;  %v3346_v17 = vcombine.low %v1103_v23, %v1110_v34  ;;  %v1137_v29 = vrot.slane %v1129_v38, %v2816_v15  ;;  %v3972_v47 = vrot.slane %v2934_v59, %v2800_v7 }
  0x42   :  { %v1147_v48 = vcombine.low %v3971_v16, %v3970_v46  ;;  %v1144_v51 = vrot.slane %v1130_v20, %v2816_v15  ;;  %v3973_v19 = vrot.slane %v2934_v59, %v2798_v6  ;;  %v3356_v21 = vcombine.low %v1120_v56, %v1127_v40 }
  0x43   :  { %v1154_v24 = vrot.slane %v1146_v44, %v2816_v15  ;;  %v3974_v23 = vrot.slane %v2934_v59, %v2804_v9  ;;  %v3975_v26 = vrot.slane %v2934_v59, %v2802_v8  ;;  %v3976_v32 = vrot.slane %v2934_v59, %v2810_v12 }
  0x44   :  { %v1163_v5 = vcombine.low %v3973_v19, %v3972_v47  ;;  %v1161_v1 = vrot.slane %v1147_v48, %v2816_v15  ;;  %v3366_v31 = vcombine.low %v1137_v29, %v1144_v51  ;;  %v3977_v34 = vrot.slane %v2934_v59, %v2806_v10 }
  0x45   :  { %v1164_v27 = vcombine.low %v3975_v26, %v3974_v23  ;;  %v3978_v36 = vrot.slane %v2934_v59, %v2814_v14  ;;  %v3979_v38 = vrot.slane %v2934_v59, %v2812_v13  ;;  %v3980_v56 = vrot.slane %v2952_v60, %v2800_v7 }
  0x46   :  { %v1171_v11 = vrot.slane %v1163_v5, %v2816_v15  ;;  %v1180_v35 = vcombine.low %v3977_v34, %v3976_v32  ;;  %v3381_v39 = vcombine.low %v1154_v24, %v1161_v1  ;;  %v3981_v40 = vrot.slane %v2952_v60, %v2798_v6 }
  0x47   :  { %v1181_v37 = vcombine.low %v3979_v38, %v3978_v36  ;;  %v1178_v20 = vrot.slane %v1164_v27, %v2816_v15  ;;  %v3982_v42 = vrot.slane %v2952_v60, %v2804_v9  ;;  %v3983_v44 = vrot.slane %v2952_v60, %v2802_v8 }
  0x48   :  { %v1197_v41 = vcombine.low %v3981_v40, %v3980_v56  ;;  %v1188_v59 = vrot.slane %v1180_v35, %v2816_v15  ;;  %v3984_v48 = vrot.slane %v2952_v60, %v2810_v12  ;;  %v3985_v29 = vrot.slane %v2952_v60, %v2806_v10 }
  0x49   :  { %v1198_v46 = vcombine.low %v3983_v44, %v3982_v42  ;;  %v1195_v16 = vrot.slane %v1181_v37, %v2816_v15  ;;  %v3986_v47 = vrot.slane %v2952_v60, %v2814_v14  ;;  %v3987_v19 = vrot.slane %v2952_v60, %v2812_v13 }
  0x4a   :  { %v1214_v51 = vcombine.low %v3985_v29, %v3984_v48  ;;  %v3410_v24 = vcombine.low %v1171_v11, %v1178_v20  ;;  %v1205_v1 = vrot.slane %v1197_v41, %v2816_v15  ;;  %v3988_v26 = vrot.slane %v2970_v57, %v2800_v7 }
  0x4b   :  { %v1215_v5 = vcombine.low %v3987_v19, %v3986_v47  ;;  %v1212_v23 = vrot.slane %v1198_v46, %v2816_v15  ;;  %v3989_v27 = vrot.slane %v2970_v57, %v2798_v6  ;;  %v3420_v34 = vcombine.low %v1188_v59, %v1195_v16 }
  0x4c   :  { %v1222_v35 = vrot.slane %v1214_v51, %v2816_v15  ;;  %v3990_v11 = vrot.slane %v2970_v57, %v2804_v9  ;;  %v3991_v36 = vrot.slane %v2970_v57, %v2802_v8  ;;  %v3992_v56 = vrot.slane %v2970_v57, %v2810_v12 }
  0x4d   :  { %v1231_v32 = vcombine.low %v3989_v27, %v3988_v26  ;;  %v1229_v60 = vrot.slane %v1215_v5, %v2816_v15  ;;  %v3430_v37 = vcombine.low %v1205_v1, %v1212_v23  ;;  %v3993_v40 = vrot.slane %v2970_v57, %v2806_v10 }
  0x4e   :  { %v1232_v38 = vcombine.low %v3991_v36, %v3990_v11  ;;  %v3994_v42 = vrot.slane %v2970_v57, %v2814_v14  ;;  %v3995_v44 = vrot.slane %v2970_v57, %v2812_v13  ;;  %v3996_v48 = vrot.slane %v2988_v58, %v2800_v7 }
  0x4f   :  { %v1239_v20 = vrot.slane %v1231_v32, %v2816_v15  ;;  %v1248_v41 = vcombine.low %v3993_v40, %v3992_v56  ;;  %v3445_v59 = vcombine.low %v1222_v35, %v1229_v60  ;;  %v3997_v29 = vrot.slane %v2988_v58, %v2798_v6 }
  0x50   :  { %v1249_v46 = vcombine.low %v3995_v44, %v3994_v42  ;;  %v1246_v16 = vrot.slane %v1232_v38, %v2816_v15  ;;  %v3998_v47 = vrot.slane %v2988_v58, %v2804_v9  ;;  %v3999_v19 = vrot.slane %v2988_v58, %v2802_v8 }
  0x51   :  { %v1265_v51 = vcombine.low %v3997_v29, %v3996_v48  ;;  %v1256_v57 = vrot.slane %v1248_v41, %v2816_v15  ;;  %v4000_v23 = vrot.slane %v2988_v58, %v2810_v12  ;;  %v4001_v26 = vrot.slane %v2988_v58, %v2806_v10 }
  0x52   :  { %v1266_v5 = vcombine.low %v3999_v19, %v3998_v47  ;;  %v1263_v1 = vrot.slane %v1249_v46, %v2816_v15  ;;  %v4002_v32 = vrot.slane %v2988_v58, %v2814_v14  ;;  %v4003_v35 = vrot.slane %v2988_v58, %v2812_v13 }
  0x53   :  { %v1282_v27 = vcombine.low %v4001_v26, %v4000_v23  ;;  %v3474_v11 = vcombine.low %v1239_v20, %v1246_v16  ;;  %v1273_v36 = vrot.slane %v1265_v51, %v2816_v15  ;;  %v4004_v56 = vrot.slane %v3006_v54, %v2800_v7 }
  0x54   :  { %v1283_v60 = vcombine.low %v4003_v35, %v4002_v32  ;;  %v1280_v38 = vrot.slane %v1266_v5, %v2816_v15  ;;  %v4005_v40 = vrot.slane %v3006_v54, %v2798_v6  ;;  %v3484_v42 = vcombine.low %v1256_v57, %v1263_v1 }
  0x55   :  { %v1290_v44 = vrot.slane %v1282_v27, %v2816_v15  ;;  %v4006_v20 = vrot.slane %v3006_v54, %v2804_v9  ;;  %v4007_v46 = vrot.slane %v3006_v54, %v2802_v8  ;;  %v4008_v51 = vrot.slane %v3006_v54, %v2810_v12 }
  0x56   :  { %v1299_v41 = vcombine.low %v4005_v40, %v4004_v56  ;;  %v1297_v58 = vrot.slane %v1283_v60, %v2816_v15  ;;  %v3494_v48 = vcombine.low %v1273_v36, %v1280_v38  ;;  %v4009_v47 = vrot.slane %v3006_v54, %v2806_v10 }
  0x57   :  { %v1300_v16 = vcombine.low %v4007_v46, %v4006_v20  ;;  %v4010_v5 = vrot.slane %v3006_v54, %v2814_v14  ;;  %v4011_v57 = vrot.slane %v3006_v54, %v2812_v13  ;;  %v4012_v27 = vrot.slane %v3024_v55, %v2800_v7 }
  0x58   :  { %v1307_v29 = vrot.slane %v1299_v41, %v2816_v15  ;;  %v1316_v19 = vcombine.low %v4009_v47, %v4008_v51  ;;  %v3509_v23 = vcombine.low %v1290_v44, %v1297_v58  ;;  %v4013_v32 = vrot.slane %v3024_v55, %v2798_v6 }
  0x59   :  { %v1317_v1 = vcombine.low %v4011_v57, %v4010_v5  ;;  %v1314_v26 = vrot.slane %v1300_v16, %v2816_v15  ;;  %v4014_v60 = vrot.slane %v3024_v55, %v2804_v9  ;;  %v4015_v36 = vrot.slane %v3024_v55, %v2802_v8 }
  0x5a   :  { %v1333_v35 = vcombine.low %v4013_v32, %v4012_v27  ;;  %v1324_v54 = vrot.slane %v1316_v19, %v2816_v15  ;;  %v4016_v40 = vrot.slane %v3024_v55, %v2810_v12  ;;  %v4017_v41 = vrot.slane %v3024_v55, %v2806_v10 }
  0x5b   :  { %v1334_v38 = vcombine.low %v4015_v36, %v4014_v60  ;;  %v1331_v56 = vrot.slane %v1317_v1, %v2816_v15  ;;  %v4018_v58 = vrot.slane %v3024_v55, %v2814_v14  ;;  %v4019_v20 = vrot.slane %v3024_v55, %v2812_v13 }
  0x5c   :  { %v1350_v44 = vcombine.low %v4017_v41, %v4016_v40  ;;  %v3538_v16 = vcombine.low %v1307_v29, %v1314_v26  ;;  %v1341_v51 = vrot.slane %v1333_v35, %v2816_v15  ;;  %v4020_v19 = vrot.slane %v3042_v52, %v2800_v7 }
  0x5d   :  { %v1351_v46 = vcombine.low %v4019_v20, %v4018_v58  ;;  %v1348_v47 = vrot.slane %v1334_v38, %v2816_v15  ;;  %v4021_v5 = vrot.slane %v3042_v52, %v2798_v6  ;;  %v3548_v1 = vcombine.low %v1324_v54, %v1331_v56 }
  0x5e   :  { %v1358_v27 = vrot.slane %v1350_v44, %v2816_v15  ;;  %v4023_v29 = vrot.slane %v3042_v52, %v2804_v9  ;;  %v4024_v26 = vrot.slane %v3042_v52, %v2802_v8  ;;  %v4026_v36 = vrot.slane %v3042_v52, %v2806_v10 }
  0x5f   :  { %v1367_v57 = vcombine.low %v4021_v5, %v4020_v19  ;;  %4022 = vst [vmem:[#allocation8_spill] sm:$0xff] %v3548_v1  ;;  %v1365_v55 = vrot.slane %v1351_v46, %v2816_v15  ;;  %v3558_v35 = vcombine.low %v1341_v51, %v1348_v47  ;;  %v4027_v54 = vrot.slane %v3042_v52, %v2814_v14 }
  0x60   :  { %v1368_v32 = vcombine.low %v4024_v26, %v4023_v29  ;;  %v1384_v38 = vcombine.low %v4026_v36, %v714_v63  ;;  %v4028_v56 = vrot.slane %v3042_v52, %v2812_v13  ;;  %v4030_v58 = vrot.slane %v3060_v53, %v2800_v7 }
  0x61   :  { %4025 = vst [vmem:[#allocation9_spill] sm:$0xff] %v3558_v35  ;;  %v1375_v60 = vrot.slane %v1367_v57, %v2816_v15  ;;  %v3573_v41 = vcombine.low %v1358_v27, %v1365_v55  ;;  %v4031_v20 = vrot.slane %v3060_v53, %v2798_v6  ;;  %v4032_v63 = vrot.slane %v3060_v53, %v2802_v8 }
  0x62   :  { %v1385_v40 = vcombine.low %v4028_v56, %v4027_v54  ;;  %v1382_v44 = vrot.slane %v1368_v32, %v2816_v15  ;;  %v1392_v52 = vrot.slane %v1384_v38, %v2816_v15  ;;  %v4033_v19 = vrot.slane %v3060_v53, %v2806_v10  ;;  %v75_v38 = vld [vmem:[#allocation4] sm:$0xff] }
  0x63   :  { %4029 = vst [vmem:[#allocation10_spill] sm:$0xff] %v3573_v41  ;;  %v1401_v46 = vcombine.low %v4031_v20, %v4030_v58  ;;  %v1402_v51 = vcombine.low %v4032_v63, %v738_v0  ;;  %v1419_v57 = vcombine.low %v750_v3, %v754_v18  ;;  %v118_v53 = vrot.slane %v75_v38, %v2798_v6 }
  0x64   :  { %v1399_v47 = vrot.slane %v1385_v40, %v2816_v15  ;;  %v1418_v5 = vcombine.low %v4033_v19, %v746_v2  ;;  %v3602_v27 = vcombine.low %v1375_v60, %v1382_v44  ;;  %v122_v3 = vrot.slane %v75_v38, %v2800_v7 }
  0x65   :  { %v1409_v0 = vrot.slane %v1401_v46, %v2816_v15  ;;  %v1416_v55 = vrot.slane %v1402_v51, %v2816_v15  ;;  %v1433_v32 = vrot.slane %v1419_v57, %v2816_v15  ;;  %v126_v18 = vrot.slane %v75_v38, %v2802_v8  ;;  %v76_v51 = vld [vmem:[#allocation4 + $0x8] sm:$0xff] }
  0x66   :  { %4034 = vst [vmem:[#allocation11_spill] sm:$0xff] %v3602_v27  ;;  %v3606_v29 = vcombine.low %v1392_v52, %v1399_v47  ;;  %v1426_v26 = vrot.slane %v1418_v5, %v2816_v15  ;;  %v130_v60 = vrot.slane %v75_v38, %v2804_v9  ;;  %v755_v54 = vcombine.low %v118_v53, %v122_v3  ;;  %v35_v5 = vld [vmem:[#allocation2] sm:$0xff] }
  0x67   :  { %v3610_v2 = vcombine.low %v1409_v0, %v1416_v55  ;;  %v134_v40 = vrot.slane %v75_v38, %v2806_v10  ;;  %v138_v44 = vrot.slane %v75_v38, %v2810_v12  ;;  %v142_v58 = vrot.slane %v75_v38, %v2812_v13 }
  0x68   :  { %4035 = vst [vmem:[#allocation12_spill] sm:$0xff] %v3606_v29  ;;  %v3612_v36 = vcombine.low %v1426_v26, %v1433_v32  ;;  %v756_v56 = vcombine.low %v126_v18, %v130_v60  ;;  %v146_v20 = vrot.slane %v75_v38, %v2814_v14  ;;  %v763_v46 = vrot.slane %v755_v54, %v2816_v15 }
  0x69   :  { %4036 = vst [vmem:[#allocation13_spill] sm:$0xff] %v3610_v2  ;;  %v772_v52 = vcombine.low %v134_v40, %v138_v44  ;;  %v150_v57 = vrot.slane %v76_v51, %v2798_v6  ;;  %v154_v0 = vrot.slane %v76_v51, %v2800_v7  ;;  %v158_v55 = vrot.slane %v76_v51, %v2802_v8 }
  0x6a   :  { %4037 = vst [vmem:[#allocation14_spill] sm:$0xff] %v3612_v36  ;;  %v770_v63 = vrot.slane %v756_v56, %v2816_v15  ;;  %v773_v47 = vcombine.low %v142_v58, %v146_v20  ;;  %v162_v26 = vrot.slane %v76_v51, %v2804_v9  ;;  %v36_v56 = vld [vmem:[#allocation2 + $0x8] sm:$0xff]  ;;  %v166_v44 = vrot.slane %v76_v51, %v2806_v10  ;;  %v37_v36 = vld [vmem:[#allocation2 + $0x10] sm:$0xff] }
  0x6b   :  { %v780_v32 = vrot.slane %v772_v52, %v2816_v15  ;;  %v789_v18 = vcombine.low %v150_v57, %v154_v0  ;;  %v170_v58 = vrot.slane %v76_v51, %v2810_v12  ;;  %v174_v20 = vrot.slane %v76_v51, %v2812_v13 }
  0x6c   :  { %v771_v19 = vcombine.low %v763_v46, %v770_v63  ;;  %v787_v38 = vrot.slane %v773_v47, %v2816_v15  ;;  %v790_v60 = vcombine.low %v158_v55, %v162_v26  ;;  %v178_v46 = vrot.slane %v76_v51, %v2814_v14 }
  0x6d   :  { %v797_v63 = vrot.slane %v789_v18, %v2816_v15  ;;  %v806_v0 = vcombine.low %v166_v44, %v170_v58 }
  0x6e   :  { %v1475_v53 = vmul.f32 %v771_v19, %v35_v5  ;;  %v788_v3 = vcombine.low %v780_v32, %v787_v38  ;;  %v804_v52 = vrot.slane %v790_v60, %v2816_v15  ;;  %v77_v5 = vld [vmem:[#allocation4 + $0x10] sm:$0xff]  ;;  %v807_v55 = vcombine.low %v174_v20, %v178_v46 }
  0x6f   :  { %v182_v51 = vrot.slane %v77_v5, %v2798_v6  ;;  %v186_v60 = vrot.slane %v77_v5, %v2800_v7  ;;  %v194_v44 = vrot.slane %v77_v5, %v2804_v9  ;;  %v814_v58 = vrot.slane %v806_v0, %v2816_v15 }
  0x70   :  { %v1555_v54 = vcombine.high %v1475_v53, %v1475_v53  ;;  %v1562_v40 = vrot.slane %v1475_v53, %v2816_v15  ;;  %v1476_v47 = vmul.f32 %v788_v3, %v36_v56  ;;  %v805_v26 = vcombine.low %v797_v63, %v804_v52 }
  0x71   :  { %v190_v3 = vrot.slane %v77_v5, %v2802_v8  ;;  %v821_v20 = vrot.slane %v807_v55, %v2816_v15 }
  0x72   :  { %v1569_v19 = vrot.slane %v1555_v54, %v2816_v15  ;;  %v1570_v57 = vcombine.high %v1562_v40, %v1562_v40  ;;  %v1572_v38 = vcombine.high %v1476_v47, %v1476_v47  ;;  %v1579_v53 = vrot.slane %v1476_v47, %v2816_v15 }
  0x73   :  { %v2396_v18 = vsel %vm2395_vm0, %v1562_v40, 0.0  ;;  %v1477_v63 = vmul.f32 %v805_v26, %v37_v36  ;;  %v822_v27 = vcombine.low %v814_v58, %v821_v20  ;;  %v824_v41 = vcombine.low %v190_v3, %v194_v44 }
  0x74   :  { %v1571_v32 = vcombine.high %v1569_v19, %v1569_v19  ;;  %v2397_v54 = vsel %vm2395_vm0, %v1570_v57, 0.0  ;;  %v2399_v56 = vsel %vm2395_vm0, %v1569_v19, 0.0  ;;  %v1586_v52 = vrot.slane %v1572_v38, %v2816_v15 }
  0x75   :  { %v2398_v46 = vadd.f32 %v2397_v54, %v2396_v18  ;;  %v1587_v47 = vcombine.high %v1579_v53, %v1579_v53  ;;  %v2403_v29 = vsel %vm2395_vm0, %v1579_v53, 0.0  ;;  %v823_v57 = vcombine.low %v182_v51, %v186_v60  ;;  %v38_v18 = vld [vmem:[#allocation2 + $0x18] sm:$0xff] }
  0x76   :  { %v2401_v40 = vsel %vm2395_vm0, %v1571_v32, 0.0  ;;  %v1588_v35 = vcombine.high %v1586_v52, %v1586_v52  ;;  %v1589_v1 = vcombine.high %v1477_v63, %v1477_v63  ;;  %v1596_v0 = vrot.slane %v1477_v63, %v2816_v15 }
  0x77   :  { %v2400_v2 = vadd.f32 %v2399_v56, %v2398_v46  ;;  %v2405_v55 = vsel %vm2395_vm0, %v1587_v47, 0.0  ;;  %v198_v26 = vrot.slane %v77_v5, %v2806_v10  ;;  %v202_v38 = vrot.slane %v77_v5, %v2810_v12  ;;  %v78_v46 = vld [vmem:[#allocation4 + $0x18] sm:$0xff] }
  0x78   :  { %v206_v32 = vrot.slane %v77_v5, %v2812_v13  ;;  %v2407_v53 = vsel %vm2395_vm0, %v1586_v52, 0.0  ;;  %v210_v51 = vrot.slane %v77_v5, %v2814_v14  ;;  %v838_v60 = vrot.slane %v824_v41, %v2816_v15 }
  0x79   :  { %v2402_v19 = vadd.f32 %v2401_v40, %v2400_v2  ;;  %v831_v2 = vrot.slane %v823_v57, %v2816_v15  ;;  %v1478_v54 = vmul.f32 %v822_v27, %v38_v18  ;;  %v1603_v56 = vrot.slane %v1589_v1, %v2816_v15  ;;  %v39_v27 = vld [vmem:[#allocation2 + $0x20] sm:$0xff] }
  0x7a   :  { %v1604_v44 = vcombine.high %v1596_v0, %v1596_v0  ;;  %v2411_v20 = vsel %vm2395_vm0, %v1596_v0, 0.0  ;;  %v840_v47 = vcombine.low %v198_v26, %v202_v38  ;;  %v841_v52 = vcombine.low %v206_v32, %v210_v51 }
  0x7b   :  { %v2404_v36 = vadd.f32 %v2403_v29, %v2402_v19  ;;  %v2409_v29 = vsel %vm2395_vm0, %v1588_v35, 0.0  ;;  %v839_v63 = vcombine.low %v831_v2, %v838_v60  ;;  %v1605_v5 = vcombine.high %v1603_v56, %v1603_v56 }
  0x7c   :  { %v1606_v19 = vcombine.high %v1478_v54, %v1478_v54  ;;  %v1613_v57 = vrot.slane %v1478_v54, %v2816_v15  ;;  %v2413_v41 = vsel %vm2395_vm0, %v1604_v44, 0.0  ;;  %v214_v1 = vrot.slane %v78_v46, %v2798_v6 }
  0x7d   :  { %v2406_v3 = vadd.f32 %v2405_v55, %v2404_v36  ;;  %v218_v35 = vrot.slane %v78_v46, %v2800_v7  ;;  %v222_v18 = vrot.slane %v78_v46, %v2802_v8  ;;  %v2415_v0 = vsel %vm2395_vm0, %v1603_v56, 0.0 }
  0x7e   :  { %v226_v36 = vrot.slane %v78_v46, %v2804_v9  ;;  %v848_v26 = vrot.slane %v840_v47, %v2816_v15  ;;  %v855_v38 = vrot.slane %v841_v52, %v2816_v15  ;;  %v1620_v51 = vrot.slane %v1606_v19, %v2816_v15 }
  0x7f   :  { %v2408_v58 = vadd.f32 %v2407_v53, %v2406_v3  ;;  %v1479_v53 = vmul.f32 %v839_v63, %v39_v27  ;;  %v1621_v2 = vcombine.high %v1613_v57, %v1613_v57  ;;  %v2417_v60 = vsel %vm2395_vm0, %v1605_v5, 0.0 }
  0x80   :  { %v2419_v7 = vsel %vm2395_vm0, %v1613_v57, 0.0  ;;  %v856_v3 = vcombine.low %v848_v26, %v855_v38  ;;  %v857_v8 = vcombine.low %v214_v1, %v218_v35  ;;  %v858_v54 = vcombine.low %v222_v18, %v226_v36 }
  0x81   :  { %v2410_v40 = vadd.f32 %v2409_v29, %v2408_v58  ;;  %v1622_v44 = vcombine.high %v1620_v51, %v1620_v51  ;;  %v1623_v9 = vcombine.high %v1479_v53, %v1479_v53  ;;  %v1630_v29 = vrot.slane %v1479_v53, %v2816_v15  ;;  %v41_v53 = vld [vmem:[#allocation2 + $0x30] sm:$0xff] }
  0x82   :  { %v2421_v58 = vsel %vm2395_vm0, %v1621_v2, 0.0  ;;  %v230_v47 = vrot.slane %v78_v46, %v2806_v10  ;;  %v234_v52 = vrot.slane %v78_v46, %v2810_v12  ;;  %v2423_v5 = vsel %vm2395_vm0, %v1620_v51, 0.0 }
  0x83   :  { %v2412_v55 = vadd.f32 %v2411_v20, %v2410_v40  ;;  %v40_v20 = vld [vmem:[#allocation2 + $0x28] sm:$0xff]  ;;  %v238_v40 = vrot.slane %v78_v46, %v2812_v13  ;;  %v242_v19 = vrot.slane %v78_v46, %v2814_v14  ;;  %v865_v57 = vrot.slane %v857_v8, %v2816_v15 }
  0x84   :  { %v1637_v1 = vrot.slane %v1623_v9, %v2816_v15  ;;  %v1638_v35 = vcombine.high %v1630_v29, %v1630_v29  ;;  %v2425_v18 = vsel %vm2395_vm0, %v1622_v44, 0.0  ;;  %v2427_v12 = vsel %vm2395_vm0, %v1630_v29, 0.0 }
  0x85   :  { %v2414_v32 = vadd.f32 %v2413_v41, %v2412_v55  ;;  %v872_v41 = vrot.slane %v858_v54, %v2816_v15  ;;  %v1480_v55 = vmul.f32 %v856_v3, %v40_v20  ;;  %v874_v13 = vcombine.low %v230_v47, %v234_v52 }
  0x86   :  { %v875_v36 = vcombine.low %v238_v40, %v242_v19  ;;  %v1639_v38 = vcombine.high %v1637_v1, %v1637_v1  ;;  %v2431_v2 = vsel %vm2395_vm0, %v1637_v1, 0.0  ;;  %v42_v40 = vld [vmem:[#allocation2 + $0x38] sm:$0xff] }
  0x87   :  { %v2416_v6 = vadd.f32 %v2415_v0, %v2414_v32  ;;  %v873_v0 = vcombine.low %v865_v57, %v872_v41  ;;  %v1640_v14 = vcombine.high %v1480_v55, %v1480_v55  ;;  %v1647_v46 = vrot.slane %v1480_v55, %v2816_v15 }
  0x88   :  { %v2429_v32 = vsel %vm2395_vm0, %v1638_v35, 0.0 }
  0x89   :  { %v2418_v56 = vadd.f32 %v2417_v60, %v2416_v6  ;;  %v882_v60 = vrot.slane %v874_v13, %v2816_v15  ;;  %v889_v6 = vrot.slane %v875_v36, %v2816_v15  ;;  %v1481_v3 = vmul.f32 %v873_v0, %v41_v53 }
  0x8a   :  { %v1654_v8 = vrot.slane %v1640_v14, %v2816_v15  ;;  %v1655_v54 = vcombine.high %v1647_v46, %v1647_v46  ;;  %v2435_v9 = vsel %vm2395_vm0, %v1647_v46, 0.0 }
  0x8b   :  { %v2420_v63 = vadd.f32 %v2419_v7, %v2418_v56  ;;  %v2433_v56 = vsel %vm2395_vm0, %v1639_v38, 0.0  ;;  %v890_v29 = vcombine.low %v882_v60, %v889_v6  ;;  %v1664_v47 = vrot.slane %v1481_v3, %v2816_v15 }
  0x8c   :  { %v1656_v20 = vcombine.high %v1654_v8, %v1654_v8  ;;  %v2437_v52 = vsel %vm2395_vm0, %v1655_v54, 0.0  ;;  %v2439_v19 = vsel %vm2395_vm0, %v1654_v8, 0.0 }
  0x8d   :  { %v2422_v27 = vadd.f32 %v2421_v58, %v2420_v63  ;;  %v1657_v63 = vcombine.high %v1481_v3, %v1481_v3  ;;  %v1482_v41 = vmul.f32 %v890_v29, %v42_v40  ;;  %v1672_v55 = vcombine.high %v1664_v47, %v1664_v47 }
  0x8e   :  { %v2441_v1 = vsel %vm2395_vm0, %v1656_v20, 0.0 }
  0x8f   :  { %v2424_v10 = vadd.f32 %v2423_v5, %v2422_v27  ;;  %v1671_v27 = vrot.slane %v1657_v63, %v2816_v15  ;;  %v1674_v0 = vcombine.high %v1482_v41, %v1482_v41  ;;  %v1681_v13 = vrot.slane %v1482_v41, %v2816_v15 }
  0x90   :  { %v2445_v36 = vsel %vm2395_vm0, %v1672_v55, 0.0  ;;  %v45_v55 = vld [vmem:[#allocation2 + $0x50] sm:$0xff] }
  0x91   :  { %v2426_v26 = vadd.f32 %v2425_v18, %v2424_v10  ;;  %v2443_v18 = vsel %vm2395_vm0, %v1664_v47, 0.0  ;;  %v2447_v14 = vsel %vm2395_vm0, %v1671_v27, 0.0  ;;  %v1688_v53 = vrot.slane %v1674_v0, %v2816_v15 }
  0x92   :  { %v2451_v6 = vsel %vm2395_vm0, %v1681_v13, 0.0 }
  0x93   :  { %v2428_v51 = vadd.f32 %v2427_v12, %v2426_v26  ;;  %v1673_v12 = vcombine.high %v1671_v27, %v1671_v27  ;;  %v43_v26 = vld [vmem:[#allocation2 + $0x40] sm:$0xff]  ;;  %v1690_v3 = vcombine.high %v1688_v53, %v1688_v53  ;;  %v2455_v29 = vsel %vm2395_vm0, %v1688_v53, 0.0  ;;  %v46_v53 = vld [vmem:[#allocation2 + $0x58] sm:$0xff] }
  0x95   :  { %v2430_v7 = vadd.f32 %v2429_v32, %v2428_v51  ;;  %v1483_v32 = vmul.f32 %v3154_v25, %v43_v26  ;;  %v1689_v51 = vcombine.high %v1681_v13, %v1681_v13  ;;  %v2457_v47 = vsel %vm2395_vm0, %v1690_v3, 0.0 }
  0x97   :  { %v2432_v44 = vadd.f32 %v2431_v2, %v2430_v7  ;;  %v2449_v2 = vsel %vm2395_vm0, %v1673_v12, 0.0  ;;  %v1691_v8 = vcombine.high %v1483_v32, %v1483_v32  ;;  %v1698_v54 = vrot.slane %v1483_v32, %v2816_v15 }
  0x99   :  { %v2434_v58 = vadd.f32 %v2433_v56, %v2432_v44  ;;  %v2453_v56 = vsel %vm2395_vm0, %v1689_v51, 0.0  ;;  %v44_v44 = vld [vmem:[#allocation2 + $0x48] sm:$0xff]  ;;  %v1705_v20 = vrot.slane %v1691_v8, %v2816_v15  ;;  %v1706_v63 = vcombine.high %v1698_v54, %v1698_v54 }
  0x9a   :  { %v2459_v40 = vsel %vm2395_vm0, %v1698_v54, 0.0 }
  0x9b   :  { %v2436_v5 = vadd.f32 %v2435_v9, %v2434_v58  ;;  %v1484_v58 = vmul.f32 %v3164_v30, %v44_v44  ;;  %v2461_v27 = vsel %vm2395_vm0, %v1706_v63, 0.0 }
  0x9d   :  { %v2438_v57 = vadd.f32 %v2437_v52, %v2436_v5  ;;  %v1715_v41 = vrot.slane %v1484_v58, %v2816_v15 }
  0x9f   :  { %v2440_v35 = vadd.f32 %v2439_v19, %v2438_v57  ;;  %v1707_v19 = vcombine.high %v1705_v20, %v1705_v20  ;;  %v1708_v57 = vcombine.high %v1484_v58, %v1484_v58  ;;  %v1723_v12 = vcombine.high %v1715_v41, %v1715_v41  ;;  %v47_v58 = vld [vmem:[#allocation2 + $0x60] sm:$0xff] }
  0xa1   :  { %v2442_v10 = vadd.f32 %v2441_v1, %v2440_v35  ;;  %v2463_v35 = vsel %vm2395_vm0, %v1705_v20, 0.0  ;;  %v2465_v0 = vsel %vm2395_vm0, %v1707_v19, 0.0  ;;  %v2469_v32 = vsel %vm2395_vm0, %v1723_v12, 0.0 }
  0xa3   :  { %v2444_v38 = vadd.f32 %v2443_v18, %v2442_v10  ;;  %v1485_v18 = vmul.f32 %v3174_v33, %v45_v55  ;;  %v1722_v10 = vrot.slane %v1708_v57, %v2816_v15 }
  0xa5   :  { %v2446_v46 = vadd.f32 %v2445_v36, %v2444_v38  ;;  %v2467_v36 = vsel %vm2395_vm0, %v1715_v41, 0.0  ;;  %v1724_v38 = vcombine.high %v1722_v10, %v1722_v10 }
  0xa7   :  { %v2448_v60 = vadd.f32 %v2447_v14, %v2446_v46  ;;  %v1725_v14 = vcombine.high %v1485_v18, %v1485_v18  ;;  %v1732_v46 = vrot.slane %v1485_v18, %v2816_v15  ;;  %v2473_v3 = vsel %vm2395_vm0, %v1724_v38, 0.0 }
  0xa9   :  { %v2450_v7 = vadd.f32 %v2449_v2, %v2448_v60  ;;  %v2471_v2 = vsel %vm2395_vm0, %v1722_v10, 0.0  ;;  %v1486_v60 = vmul.f32 %v3189_v4, %v46_v53  ;;  %v2475_v54 = vsel %vm2395_vm0, %v1732_v46, 0.0 }
  0xab   :  { %v2452_v9 = vadd.f32 %v2451_v6, %v2450_v7  ;;  %v1739_v6 = vrot.slane %v1725_v14, %v2816_v15  ;;  %v1740_v7 = vcombine.high %v1732_v46, %v1732_v46 }
  0xad   :  { %v2454_v25 = vadd.f32 %v2453_v56, %v2452_v9  ;;  %v1741_v44 = vcombine.high %v1739_v6, %v1739_v6  ;;  %v1742_v9 = vcombine.high %v1486_v60, %v1486_v60  ;;  %v2479_v63 = vsel %vm2395_vm0, %v1739_v6, 0.0 }
  0xaf   :  { %v2456_v52 = vadd.f32 %v2455_v29, %v2454_v25  ;;  %v1749_v29 = vrot.slane %v1486_v60, %v2816_v15  ;;  %v2477_v25 = vsel %vm2395_vm0, %v1740_v7, 0.0 }
  0xb1   :  { %v2458_v5 = vadd.f32 %v2457_v47, %v2456_v52  ;;  %v1487_v47 = vmul.f32 %v3218_v43, %v47_v58  ;;  %v1756_v52 = vrot.slane %v1742_v9, %v2816_v15  ;;  %v2483_v57 = vsel %vm2395_vm0, %v1749_v29, 0.0 }
  0xb3   :  { %v2460_v1 = vadd.f32 %v2459_v40, %v2458_v5  ;;  %v1757_v40 = vcombine.high %v1749_v29, %v1749_v29  ;;  %v2481_v5 = vsel %vm2395_vm0, %v1741_v44, 0.0  ;;  %v1759_v55 = vcombine.high %v1487_v47, %v1487_v47 }
  0xb4   :  { %v2487_v10 = vsel %vm2395_vm0, %v1756_v52, 0.0 }
  0xb5   :  { %v2462_v30 = vadd.f32 %v2461_v27, %v2460_v1  ;;  %v1758_v27 = vcombine.high %v1756_v52, %v1756_v52  ;;  %v1766_v1 = vrot.slane %v1487_v47, %v2816_v15 }
  0xb7   :  { %v2464_v13 = vadd.f32 %v2463_v35, %v2462_v30  ;;  %v2485_v35 = vsel %vm2395_vm0, %v1757_v40, 0.0  ;;  %v48_v30 = vld [vmem:[#allocation2 + $0x68] sm:$0xff]  ;;  %v2491_v38 = vsel %vm2395_vm0, %v1766_v1, 0.0 }
  0xb8   :  { %v1488_v12 = vmul.f32 %v3228_v49, %v48_v30  ;;  %v51_v30 = vld [vmem:[#allocation2 + $0x80] sm:$0xff] }
  0xb9   :  { %v2466_v26 = vadd.f32 %v2465_v0, %v2464_v13  ;;  %v1773_v0 = vrot.slane %v1759_v55, %v2816_v15  ;;  %v1774_v13 = vcombine.high %v1766_v1, %v1766_v1 }
  0xba   :  { %v1783_v53 = vrot.slane %v1488_v12, %v2816_v15 }
  0xbb   :  { %v2468_v51 = vadd.f32 %v2467_v36, %v2466_v26  ;;  %v2489_v36 = vsel %vm2395_vm0, %v1758_v27, 0.0  ;;  %v1775_v46 = vcombine.high %v1773_v0, %v1773_v0  ;;  %v2495_v60 = vsel %vm2395_vm0, %v1773_v0, 0.0 }
  0xbd   :  { %v2470_v33 = vadd.f32 %v2469_v32, %v2468_v51  ;;  %v1776_v32 = vcombine.high %v1488_v12, %v1488_v12  ;;  %v2493_v51 = vsel %vm2395_vm0, %v1774_v13, 0.0 }
  0xbf   :  { %v2472_v8 = vadd.f32 %v2471_v2, %v2470_v33  ;;  %v49_v2 = vld [vmem:[#allocation2 + $0x70] sm:$0xff]  ;;  %v1790_v7 = vrot.slane %v1776_v32, %v2816_v15 }
  0xc0   :  { %v1489_v6 = vmul.f32 %v3238_v61, %v49_v2 }
  0xc1   :  { %v2474_v56 = vadd.f32 %v2473_v3, %v2472_v8  ;;  %v1791_v3 = vcombine.high %v1783_v53, %v1783_v53  ;;  %v2497_v8 = vsel %vm2395_vm0, %v1775_v46, 0.0  ;;  %v1792_v9 = vcombine.high %v1790_v7, %v1790_v7 }
  0xc2   :  { %v1793_v29 = vcombine.high %v1489_v6, %v1489_v6 }
  0xc3   :  { %v2476_v20 = vadd.f32 %v2475_v54, %v2474_v56  ;;  %v2499_v56 = vsel %vm2395_vm0, %v1783_v53, 0.0  ;;  %v2501_v58 = vsel %vm2395_vm0, %v1791_v3, 0.0 }
  0xc4   :  { %v1807_v52 = vrot.slane %v1793_v29, %v2816_v15 }
  0xc5   :  { %v2478_v4 = vadd.f32 %v2477_v25, %v2476_v20  ;;  %v1800_v25 = vrot.slane %v1489_v6, %v2816_v15  ;;  %v50_v20 = vld [vmem:[#allocation2 + $0x78] sm:$0xff] }
  0xc6   :  { %v1490_v47 = vmul.f32 %v3253_v28, %v50_v20  ;;  %v1809_v27 = vcombine.high %v1807_v52, %v1807_v52 }
  0xc7   :  { %v2480_v19 = vadd.f32 %v2479_v63, %v2478_v4  ;;  %v2503_v4 = vsel %vm2395_vm0, %v1790_v7, 0.0  ;;  %v1808_v40 = vcombine.high %v1800_v25, %v1800_v25 }
  0xc8   :  { %v1810_v55 = vcombine.high %v1490_v47, %v1490_v47  ;;  %v1817_v1 = vrot.slane %v1490_v47, %v2816_v15  ;;  %v2513_v13 = vsel %vm2395_vm0, %v1809_v27, 0.0 }
  0xc9   :  { %v2482_v41 = vadd.f32 %v2481_v5, %v2480_v19  ;;  %v2505_v5 = vsel %vm2395_vm0, %v1792_v9, 0.0 }
  0xca   :  { %v1824_v12 = vrot.slane %v1810_v55, %v2816_v15  ;;  %v1825_v0 = vcombine.high %v1817_v1, %v1817_v1  ;;  %v54_v55 = vld [vmem:[#allocation2 + $0x98] sm:$0xff] }
  0xcb   :  { %v2484_v18 = vadd.f32 %v2483_v57, %v2482_v41  ;;  %v2507_v57 = vsel %vm2395_vm0, %v1800_v25, 0.0  ;;  %v53_v25 = vld [vmem:[#allocation2 + $0x90] sm:$0xff] }
  0xcc   :  { %v2517_v53 = vsel %vm2395_vm0, %v1825_v0, 0.0 }
  0xcd   :  { %v2486_v43 = vadd.f32 %v2485_v35, %v2484_v18  ;;  %v2509_v35 = vsel %vm2395_vm0, %v1808_v40, 0.0 }
  0xcf   :  { %v2488_v26 = vadd.f32 %v2487_v10, %v2486_v43  ;;  %v2511_v10 = vsel %vm2395_vm0, %v1807_v52, 0.0  ;;  %v1491_v43 = vmul.f32 %v3282_v45, %v51_v30  ;;  %v1494_v30 = vmul.f32 %v3317_v62, %v54_v55 }
  0xd1   :  { %v2490_v14 = vadd.f32 %v2489_v36, %v2488_v26  ;;  %v2515_v26 = vsel %vm2395_vm0, %v1817_v1, 0.0  ;;  %v1827_v46 = vcombine.high %v1491_v43, %v1491_v43  ;;  %v1834_v32 = vrot.slane %v1491_v43, %v2816_v15 }
  0xd3   :  { %v2492_v33 = vadd.f32 %v2491_v38, %v2490_v14  ;;  %v1826_v14 = vcombine.high %v1824_v12, %v1824_v12  ;;  %v1842_v6 = vcombine.high %v1834_v32, %v1834_v32 }
  0xd5   :  { %v2494_v49 = vadd.f32 %v2493_v51, %v2492_v33  ;;  %v52_v51 = vld [vmem:[#allocation2 + $0x88] sm:$0xff]  ;;  %v2519_v33 = vsel %vm2395_vm0, %v1824_v12, 0.0  ;;  %v2521_v7 = vsel %vm2395_vm0, %v1826_v14, 0.0  ;;  %v2525_v29 = vsel %vm2395_vm0, %v1842_v6, 0.0  ;;  %v55_v14 = vld [vmem:[#allocation2 + $0xa0] sm:$0xff] }
  0xd7   :  { %v2496_v54 = vadd.f32 %v2495_v60, %v2494_v49  ;;  %v1492_v60 = vmul.f32 %v3292_v50, %v52_v51  ;;  %v1841_v49 = vrot.slane %v1827_v46, %v2816_v15 }
  0xd9   :  { %v2498_v44 = vadd.f32 %v2497_v8, %v2496_v54  ;;  %v2523_v8 = vsel %vm2395_vm0, %v1834_v32, 0.0  ;;  %v1851_v9 = vrot.slane %v1492_v60, %v2816_v15  ;;  %v2527_v20 = vsel %vm2395_vm0, %v1841_v49, 0.0 }
  0xdb   :  { %v2500_v63 = vadd.f32 %v2499_v56, %v2498_v44  ;;  %v1843_v56 = vcombine.high %v1841_v49, %v1841_v49  ;;  %v1844_v44 = vcombine.high %v1492_v60, %v1492_v60  ;;  %v2531_v40 = vsel %vm2395_vm0, %v1851_v9, 0.0 }
  0xdd   :  { %v2502_v61 = vadd.f32 %v2501_v58, %v2500_v63  ;;  %v1493_v63 = vmul.f32 %v3302_v22, %v53_v25  ;;  %v2529_v47 = vsel %vm2395_vm0, %v1843_v56, 0.0 }
  0xdf   :  { %v2504_v19 = vadd.f32 %v2503_v4, %v2502_v61  ;;  %v1858_v4 = vrot.slane %v1844_v44, %v2816_v15  ;;  %v1859_v61 = vcombine.high %v1851_v9, %v1851_v9 }
  0xe1   :  { %v2506_v41 = vadd.f32 %v2505_v5, %v2504_v19  ;;  %v1860_v19 = vcombine.high %v1858_v4, %v1858_v4  ;;  %v2533_v27 = vsel %vm2395_vm0, %v1859_v61, 0.0 }
  0xe3   :  { %v2508_v18 = vadd.f32 %v2507_v57, %v2506_v41  ;;  %v1861_v57 = vcombine.high %v1493_v63, %v1493_v63  ;;  %v1868_v41 = vrot.slane %v1493_v63, %v2816_v15 }
  0xe5   :  { %v2510_v28 = vadd.f32 %v2509_v35, %v2508_v18  ;;  %v2535_v35 = vsel %vm2395_vm0, %v1858_v4, 0.0  ;;  %v1875_v18 = vrot.slane %v1861_v57, %v2816_v15  ;;  %v2539_v12 = vsel %vm2395_vm0, %v1868_v41, 0.0 }
  0xe7   :  { %v2512_v36 = vadd.f32 %v2511_v10, %v2510_v28  ;;  %v1876_v10 = vcombine.high %v1868_v41, %v1868_v41  ;;  %v2537_v28 = vsel %vm2395_vm0, %v1860_v19, 0.0  ;;  %v2543_v32 = vsel %vm2395_vm0, %v1875_v18, 0.0 }
  0xe9   :  { %v2514_v38 = vadd.f32 %v2513_v13, %v2512_v36  ;;  %v1877_v13 = vcombine.high %v1875_v18, %v1875_v18  ;;  %v1878_v36 = vcombine.high %v1494_v30, %v1494_v30 }
  0xeb   :  { %v2516_v2 = vadd.f32 %v2515_v26, %v2514_v38  ;;  %v1885_v26 = vrot.slane %v1494_v30, %v2816_v15  ;;  %v2541_v38 = vsel %vm2395_vm0, %v1876_v10, 0.0  ;;  %v1892_v51 = vrot.slane %v1878_v36, %v2816_v15 }
  0xed   :  { %v2518_v45 = vadd.f32 %v2517_v53, %v2516_v2  ;;  %v1495_v53 = vmul.f32 %v3346_v17, %v55_v14  ;;  %v1893_v2 = vcombine.high %v1885_v26, %v1885_v26  ;;  %v2547_v60 = vsel %vm2395_vm0, %v1885_v26, 0.0 }
  0xee   :  { %v1894_v6 = vcombine.high %v1892_v51, %v1892_v51  ;;  %v2551_v44 = vsel %vm2395_vm0, %v1892_v51, 0.0 }
  0xef   :  { %v2520_v3 = vadd.f32 %v2519_v33, %v2518_v45  ;;  %v2545_v33 = vsel %vm2395_vm0, %v1877_v13, 0.0 }
  0xf1   :  { %v2522_v54 = vadd.f32 %v2521_v7, %v2520_v3  ;;  %v1895_v7 = vcombine.high %v1495_v53, %v1495_v53  ;;  %v1902_v3 = vrot.slane %v1495_v53, %v2816_v15 }
  0xf3   :  { %v2524_v58 = vadd.f32 %v2523_v8, %v2522_v54  ;;  %v2549_v8 = vsel %vm2395_vm0, %v1893_v2, 0.0  ;;  %v56_v54 = vld [vmem:[#allocation2 + $0xa8] sm:$0xff]  ;;  %v1910_v25 = vcombine.high %v1902_v3, %v1902_v3 }
  0xf4   :  { %v1496_v9 = vmul.f32 %v3356_v21, %v56_v54 }
  0xf5   :  { %v2526_v50 = vadd.f32 %v2525_v29, %v2524_v58  ;;  %v1909_v29 = vrot.slane %v1895_v7, %v2816_v15  ;;  %v2553_v58 = vsel %vm2395_vm0, %v1894_v6, 0.0 }
  0xf6   :  { %v1912_v61 = vcombine.high %v1496_v9, %v1496_v9 }
  0xf7   :  { %v2528_v52 = vadd.f32 %v2527_v20, %v2526_v50  ;;  %v2555_v50 = vsel %vm2395_vm0, %v1902_v3, 0.0  ;;  %v1911_v4 = vcombine.high %v1909_v29, %v1909_v29  ;;  %v2559_v19 = vsel %vm2395_vm0, %v1909_v29, 0.0 }
  0xf8   :  { %v1926_v41 = vrot.slane %v1912_v61, %v2816_v15 }
  0xf9   :  { %v2530_v5 = vadd.f32 %v2529_v47, %v2528_v52  ;;  %v1919_v47 = vrot.slane %v1496_v9, %v2816_v15  ;;  %v2557_v52 = vsel %vm2395_vm0, %v1910_v25, 0.0  ;;  %v2561_v55 = vsel %vm2395_vm0, %v1911_v4, 0.0  ;;  %v60_v25 = vld [vmem:[#allocation2 + $0xc8] sm:$0xff] }
  0xfa   :  { %v1928_v30 = vcombine.high %v1926_v41, %v1926_v41 }
  0xfb   :  { %v2532_v1 = vadd.f32 %v2531_v40, %v2530_v5  ;;  %v57_v40 = vld [vmem:[#allocation2 + $0xb0] sm:$0xff] }
  0xfc   :  { %v1497_v57 = vmul.f32 %v3366_v31, %v57_v40 }
  0xfd   :  { %v2534_v22 = vadd.f32 %v2533_v27, %v2532_v1  ;;  %v1927_v27 = vcombine.high %v1919_v47, %v1919_v47 }
  0xfe   :  { %v1929_v18 = vcombine.high %v1497_v57, %v1497_v57  ;;  %v1936_v10 = vrot.slane %v1497_v57, %v2816_v15 }
  0xff   :  { %v2536_v43 = vadd.f32 %v2535_v35, %v2534_v22  ;;  %v2563_v35 = vsel %vm2395_vm0, %v1919_v47, 0.0 }
 0x100   :  { %v1943_v36 = vrot.slane %v1929_v18, %v2816_v15  ;;  %v1944_v26 = vcombine.high %v1936_v10, %v1936_v10 }
 0x101   :  { %v2538_v0 = vadd.f32 %v2537_v28, %v2536_v43  ;;  %v2565_v28 = vsel %vm2395_vm0, %v1927_v27, 0.0  ;;  %v58_v43 = vld [vmem:[#allocation2 + $0xb8] sm:$0xff] }
 0x102   :  { %v1498_v13 = vmul.f32 %v3381_v39, %v58_v43  ;;  %v2573_v2 = vsel %vm2395_vm0, %v1944_v26, 0.0 }
 0x103   :  { %v2540_v46 = vadd.f32 %v2539_v12, %v2538_v0  ;;  %v2567_v0 = vsel %vm2395_vm0, %v1926_v41, 0.0  ;;  %v61_v41 = vld [vmem:[#allocation2 + $0xd0] sm:$0xff] }
 0x104   :  { %v1946_v53 = vcombine.high %v1498_v13, %v1498_v13  ;;  %v1953_v51 = vrot.slane %v1498_v13, %v2816_v15  ;;  %v62_v13 = vld [vmem:[#allocation2 + $0xd8] sm:$0xff] }
 0x105   :  { %v2542_v62 = vadd.f32 %v2541_v38, %v2540_v46  ;;  %v2569_v38 = vsel %vm2395_vm0, %v1928_v30, 0.0  ;;  %v2571_v46 = vsel %vm2395_vm0, %v1936_v10, 0.0 }
 0x106   :  { %v1960_v6 = vrot.slane %v1946_v53, %v2816_v15  ;;  %v1961_v7 = vcombine.high %v1953_v51, %v1953_v51  ;;  %v2579_v54 = vsel %vm2395_vm0, %v1953_v51, 0.0 }
 0x107   :  { %v2544_v45 = vadd.f32 %v2543_v32, %v2542_v62  ;;  %v1945_v62 = vcombine.high %v1943_v36, %v1943_v36 }
 0x108   :  { %v2581_v29 = vsel %vm2395_vm0, %v1961_v7, 0.0 }
 0x109   :  { %v2546_v49 = vadd.f32 %v2545_v33, %v2544_v45  ;;  %v59_v33 = vld [vmem:[#allocation2 + $0xc0] sm:$0xff]  ;;  %v2577_v3 = vsel %vm2395_vm0, %v1945_v62, 0.0 }
 0x10b   :  { %v2548_v56 = vadd.f32 %v2547_v60, %v2546_v49  ;;  %v2575_v60 = vsel %vm2395_vm0, %v1943_v36, 0.0  ;;  %v1499_v49 = vmul.f32 %v3410_v24, %v59_v33 }
 0x10d   :  { %v2550_v17 = vadd.f32 %v2549_v8, %v2548_v56  ;;  %v1970_v9 = vrot.slane %v1499_v49, %v2816_v15 }
 0x10f   :  { %v2552_v20 = vadd.f32 %v2551_v44, %v2550_v17  ;;  %v1962_v44 = vcombine.high %v1960_v6, %v1960_v6  ;;  %v1963_v17 = vcombine.high %v1499_v49, %v1499_v49  ;;  %v1978_v4 = vcombine.high %v1970_v9, %v1970_v9 }
 0x111   :  { %v2554_v63 = vadd.f32 %v2553_v58, %v2552_v20  ;;  %v2583_v20 = vsel %vm2395_vm0, %v1960_v6, 0.0  ;;  %v2585_v61 = vsel %vm2395_vm0, %v1962_v44, 0.0  ;;  %v2589_v57 = vsel %vm2395_vm0, %v1978_v4, 0.0 }
 0x113   :  { %v2556_v5 = vadd.f32 %v2555_v50, %v2554_v63  ;;  %v1500_v50 = vmul.f32 %v3420_v34, %v60_v25  ;;  %v1977_v63 = vrot.slane %v1963_v17, %v2816_v15 }
 0x115   :  { %v2558_v21 = vadd.f32 %v2557_v52, %v2556_v5  ;;  %v2587_v52 = vsel %vm2395_vm0, %v1970_v9, 0.0  ;;  %v1979_v5 = vcombine.high %v1977_v63, %v1977_v63 }
 0x117   :  { %v2560_v1 = vadd.f32 %v2559_v19, %v2558_v21  ;;  %v1980_v19 = vcombine.high %v1500_v50, %v1500_v50  ;;  %v1987_v21 = vrot.slane %v1500_v50, %v2816_v15  ;;  %v2593_v30 = vsel %vm2395_vm0, %v1979_v5, 0.0 }
 0x119   :  { %v2562_v22 = vadd.f32 %v2561_v55, %v2560_v1  ;;  %v2591_v55 = vsel %vm2395_vm0, %v1977_v63, 0.0  ;;  %v1501_v1 = vmul.f32 %v3430_v37, %v61_v41  ;;  %v2595_v10 = vsel %vm2395_vm0, %v1987_v21, 0.0 }
 0x11b   :  { %v2564_v12 = vadd.f32 %v2563_v35, %v2562_v22  ;;  %v1994_v35 = vrot.slane %v1980_v19, %v2816_v15  ;;  %v1995_v22 = vcombine.high %v1987_v21, %v1987_v21 }
 0x11d   :  { %v2566_v31 = vadd.f32 %v2565_v28, %v2564_v12  ;;  %v1996_v43 = vcombine.high %v1994_v35, %v1994_v35  ;;  %v1997_v12 = vcombine.high %v1501_v1, %v1501_v1  ;;  %v2599_v26 = vsel %vm2395_vm0, %v1994_v35, 0.0 }
 0x11f   :  { %v2568_v14 = vadd.f32 %v2567_v0, %v2566_v31  ;;  %v2004_v0 = vrot.slane %v1501_v1, %v2816_v15  ;;  %v2597_v31 = vsel %vm2395_vm0, %v1995_v22, 0.0 }
 0x121   :  { %v2570_v32 = vadd.f32 %v2569_v38, %v2568_v14  ;;  %v1502_v38 = vmul.f32 %v3445_v59, %v62_v13  ;;  %v2011_v14 = vrot.slane %v1997_v12, %v2816_v15  ;;  %v2603_v53 = vsel %vm2395_vm0, %v2004_v0, 0.0  ;;  %v66_v13 = vld [vmem:[#allocation2 + $0xf8] sm:$0xff] }
 0x123   :  { %v2572_v45 = vadd.f32 %v2571_v46, %v2570_v32  ;;  %v2012_v46 = vcombine.high %v2004_v0, %v2004_v0  ;;  %v2601_v32 = vsel %vm2395_vm0, %v1996_v43, 0.0  ;;  %v2014_v33 = vcombine.high %v1502_v38, %v1502_v38 }
 0x124   :  { %v2607_v6 = vsel %vm2395_vm0, %v2011_v14, 0.0 }
 0x125   :  { %v2574_v39 = vadd.f32 %v2573_v2, %v2572_v45  ;;  %v2013_v2 = vcombine.high %v2011_v14, %v2011_v14  ;;  %v2021_v45 = vrot.slane %v1502_v38, %v2816_v15 }
 0x127   :  { %v2576_v8 = vadd.f32 %v2575_v60, %v2574_v39  ;;  %v2605_v60 = vsel %vm2395_vm0, %v2012_v46, 0.0  ;;  %v63_v39 = vld [vmem:[#allocation2 + $0xe0] sm:$0xff]  ;;  %v2611_v44 = vsel %vm2395_vm0, %v2021_v45, 0.0 }
 0x128   :  { %v1503_v7 = vmul.f32 %v3474_v11, %v63_v39 }
 0x129   :  { %v2578_v56 = vadd.f32 %v2577_v3, %v2576_v8  ;;  %v2028_v3 = vrot.slane %v2014_v33, %v2816_v15  ;;  %v2029_v8 = vcombine.high %v2021_v45, %v2021_v45 }
 0x12a   :  { %v2038_v25 = vrot.slane %v1503_v7, %v2816_v15 }
 0x12b   :  { %v2580_v58 = vadd.f32 %v2579_v54, %v2578_v56  ;;  %v2609_v54 = vsel %vm2395_vm0, %v2013_v2, 0.0  ;;  %v2030_v9 = vcombine.high %v2028_v3, %v2028_v3  ;;  %v2615_v50 = vsel %vm2395_vm0, %v2028_v3, 0.0 }
 0x12d   :  { %v2582_v24 = vadd.f32 %v2581_v29, %v2580_v58  ;;  %v2031_v29 = vcombine.high %v1503_v7, %v1503_v7  ;;  %v2613_v58 = vsel %vm2395_vm0, %v2029_v8, 0.0 }
 0x12f   :  { %v2584_v47 = vadd.f32 %v2583_v20, %v2582_v24  ;;  %v64_v20 = vld [vmem:[#allocation2 + $0xe8] sm:$0xff]  ;;  %v2045_v4 = vrot.slane %v2031_v29, %v2816_v15 }
 0x130   :  { %v1504_v63 = vmul.f32 %v3484_v42, %v64_v20 }
 0x131   :  { %v2586_v40 = vadd.f32 %v2585_v61, %v2584_v47  ;;  %v2046_v61 = vcombine.high %v2038_v25, %v2038_v25  ;;  %v2617_v47 = vsel %vm2395_vm0, %v2030_v9, 0.0  ;;  %v2047_v19 = vcombine.high %v2045_v4, %v2045_v4 }
 0x132   :  { %v2048_v21 = vcombine.high %v1504_v63, %v1504_v63 }
 0x133   :  { %v2588_v27 = vadd.f32 %v2587_v52, %v2586_v40  ;;  %v2619_v40 = vsel %vm2395_vm0, %v2038_v25, 0.0  ;;  %v2621_v41 = vsel %vm2395_vm0, %v2046_v61, 0.0  ;;  %v68_v25 = vld [vmem:[#allocation2 + $0x108] sm:$0xff] }
 0x134   :  { %v2062_v35 = vrot.slane %v2048_v21, %v2816_v15 }
 0x135   :  { %v2590_v34 = vadd.f32 %v2589_v57, %v2588_v27  ;;  %v2055_v57 = vrot.slane %v1504_v63, %v2816_v15  ;;  %v65_v27 = vld [vmem:[#allocation2 + $0xf0] sm:$0xff] }
 0x136   :  { %v1505_v1 = vmul.f32 %v3494_v48, %v65_v27  ;;  %v2064_v43 = vcombine.high %v2062_v35, %v2062_v35 }
 0x137   :  { %v2592_v18 = vadd.f32 %v2591_v55, %v2590_v34  ;;  %v2623_v34 = vsel %vm2395_vm0, %v2045_v4, 0.0  ;;  %v2063_v22 = vcombine.high %v2055_v57, %v2055_v57 }
 0x138   :  { %v2065_v12 = vcombine.high %v1505_v1, %v1505_v1  ;;  %v2072_v0 = vrot.slane %v1505_v1, %v2816_v15  ;;  %v2633_v46 = vsel %vm2395_vm0, %v2064_v43, 0.0 }
 0x139   :  { %v2594_v28 = vadd.f32 %v2593_v30, %v2592_v18  ;;  %v2625_v30 = vsel %vm2395_vm0, %v2047_v19, 0.0 }
 0x13a   :  { %v2079_v38 = vrot.slane %v2065_v12, %v2816_v15  ;;  %v2080_v14 = vcombine.high %v2072_v0, %v2072_v0 }
 0x13b   :  { %v2596_v36 = vadd.f32 %v2595_v10, %v2594_v28  ;;  %v2627_v10 = vsel %vm2395_vm0, %v2055_v57, 0.0  ;;  %v69_v57 = vld [vmem:[#allocation2 + $0x110] sm:$0xff] }
 0x13c   :  { %v2637_v45 = vsel %vm2395_vm0, %v2080_v14, 0.0 }
 0x13d   :  { %v2598_v37 = vadd.f32 %v2597_v31, %v2596_v36  ;;  %v2629_v31 = vsel %vm2395_vm0, %v2063_v22, 0.0 }
 0x13f   :  { %v2600_v62 = vadd.f32 %v2599_v26, %v2598_v37  ;;  %v2631_v26 = vsel %vm2395_vm0, %v2062_v35, 0.0  ;;  %v1506_v37 = vmul.f32 %v3509_v23, %v66_v13 }
 0x141   :  { %v2602_v51 = vadd.f32 %v2601_v32, %v2600_v62  ;;  %v2635_v62 = vsel %vm2395_vm0, %v2072_v0, 0.0  ;;  %v2082_v2 = vcombine.high %v1506_v37, %v1506_v37  ;;  %v2089_v33 = vrot.slane %v1506_v37, %v2816_v15 }
 0x143   :  { %v2604_v49 = vadd.f32 %v2603_v53, %v2602_v51  ;;  %v2081_v51 = vcombine.high %v2079_v38, %v2079_v38  ;;  %v2097_v7 = vcombine.high %v2089_v33, %v2089_v33 }
 0x145   :  { %v2606_v59 = vadd.f32 %v2605_v60, %v2604_v49  ;;  %v67_v60 = vld [vmem:[#allocation2 + $0x100] sm:$0xff]  ;;  %v2639_v49 = vsel %vm2395_vm0, %v2079_v38, 0.0  ;;  %v2641_v3 = vsel %vm2395_vm0, %v2081_v51, 0.0  ;;  %v2645_v29 = vsel %vm2395_vm0, %v2097_v7, 0.0 }
 0x147   :  { %v2608_v56 = vadd.f32 %v2607_v6, %v2606_v59  ;;  %v1507_v6 = vmul.f32 %v3538_v16, %v67_v60  ;;  %v2096_v59 = vrot.slane %v2082_v2, %v2816_v15  ;;  %v71_v60 = vld [vmem:[#allocation2 + $0x120] sm:$0xff] }
 0x149   :  { %v2610_v17 = vadd.f32 %v2609_v54, %v2608_v56  ;;  %v2643_v54 = vsel %vm2395_vm0, %v2089_v33, 0.0  ;;  %v2106_v9 = vrot.slane %v1507_v6, %v2816_v15  ;;  %v2647_v20 = vsel %vm2395_vm0, %v2096_v59, 0.0 }
 0x14b   :  { %v2612_v24 = vadd.f32 %v2611_v44, %v2610_v17  ;;  %v2098_v44 = vcombine.high %v2096_v59, %v2096_v59  ;;  %v2099_v17 = vcombine.high %v1507_v6, %v1507_v6  ;;  %v2114_v63 = vcombine.high %v2106_v9, %v2106_v9  ;;  %v4041_v6 = vld [vmem:[#allocation11_spill] sm:$0xff] }
 0x14c   :  { %v1511_v59 = vmul.f32 %v4041_v6, %v71_v60 }
 0x14d   :  { %v2614_v11 = vadd.f32 %v2613_v58, %v2612_v24  ;;  %v4038_v24 = vld [vmem:[#allocation8_spill] sm:$0xff]  ;;  %v2649_v4 = vsel %vm2395_vm0, %v2098_v44, 0.0  ;;  %v2653_v21 = vsel %vm2395_vm0, %v2114_v63, 0.0 }
 0x14f   :  { %v2616_v52 = vadd.f32 %v2615_v50, %v2614_v11  ;;  %v1508_v50 = vmul.f32 %v4038_v24, %v68_v25  ;;  %v2113_v11 = vrot.slane %v2099_v17, %v2816_v15 }
 0x151   :  { %v2618_v5 = vadd.f32 %v2617_v47, %v2616_v52  ;;  %v2651_v47 = vsel %vm2395_vm0, %v2106_v9, 0.0  ;;  %v2123_v19 = vrot.slane %v1508_v50, %v2816_v15  ;;  %v2655_v27 = vsel %vm2395_vm0, %v2113_v11, 0.0 }
 0x152   :  { %v2167_v9 = vcombine.high %v1511_v59, %v1511_v59 }
 0x153   :  { %v2620_v55 = vadd.f32 %v2619_v40, %v2618_v5  ;;  %v2115_v40 = vcombine.high %v2113_v11, %v2113_v11  ;;  %v2116_v5 = vcombine.high %v1508_v50, %v1508_v50  ;;  %v2131_v35 = vcombine.high %v2123_v19, %v2123_v19  ;;  %v4042_v50 = vld [vmem:[#allocation12_spill] sm:$0xff] }
 0x154   :  { %v2181_v63 = vrot.slane %v2167_v9, %v2816_v15 }
 0x155   :  { %v2622_v42 = vadd.f32 %v2621_v41, %v2620_v55  ;;  %v2130_v1 = vrot.slane %v2116_v5, %v2816_v15  ;;  %v2657_v22 = vsel %vm2395_vm0, %v2115_v40, 0.0  ;;  %v2661_v0 = vsel %vm2395_vm0, %v2131_v35, 0.0 }
 0x156   :  { %v2183_v5 = vcombine.high %v2181_v63, %v2181_v63 }
 0x157   :  { %v2624_v18 = vadd.f32 %v2623_v34, %v2622_v42  ;;  %v4039_v34 = vld [vmem:[#allocation9_spill] sm:$0xff] }
 0x158   :  { %v1509_v42 = vmul.f32 %v4039_v34, %v69_v57 }
 0x159   :  { %v2626_v28 = vadd.f32 %v2625_v30, %v2624_v18  ;;  %v2659_v18 = vsel %vm2395_vm0, %v2123_v19, 0.0 }
 0x15a   :  { %v2133_v43 = vcombine.high %v1509_v42, %v1509_v42  ;;  %v2140_v12 = vrot.slane %v1509_v42, %v2816_v15  ;;  %v4043_v42 = vld [vmem:[#allocation13_spill] sm:$0xff] }
 0x15b   :  { %v2628_v36 = vadd.f32 %v2627_v10, %v2626_v28  ;;  %v2132_v28 = vcombine.high %v2130_v1, %v2130_v1 }
 0x15c   :  { %v2147_v38 = vrot.slane %v2133_v43, %v2816_v15  ;;  %v2148_v14 = vcombine.high %v2140_v12, %v2140_v12 }
 0x15d   :  { %v2630_v48 = vadd.f32 %v2629_v31, %v2628_v36  ;;  %v70_v31 = vld [vmem:[#allocation2 + $0x118] sm:$0xff]  ;;  %v2663_v36 = vsel %vm2395_vm0, %v2130_v1, 0.0 }
 0x15e   :  { %v2149_v51 = vcombine.high %v2147_v38, %v2147_v38 }
 0x15f   :  { %v2632_v32 = vadd.f32 %v2631_v26, %v2630_v48  ;;  %v4040_v48 = vld [vmem:[#allocation10_spill] sm:$0xff] }
 0x160   :  { %v1510_v37 = vmul.f32 %v4040_v48, %v70_v31 }
 0x161   :  { %v2634_v53 = vadd.f32 %v2633_v46, %v2632_v32  ;;  %v2665_v46 = vsel %vm2395_vm0, %v2132_v28, 0.0 }
 0x162   :  { %v2150_v2 = vcombine.high %v1510_v37, %v1510_v37  ;;  %v2157_v33 = vrot.slane %v1510_v37, %v2816_v15  ;;  %v4044_v37 = vld [vmem:[#allocation14_spill] sm:$0xff] }
 0x163   :  { %v2636_v39 = vadd.f32 %v2635_v62, %v2634_v53  ;;  %v2667_v62 = vsel %vm2395_vm0, %v2140_v12, 0.0 }
 0x164   :  { %v2164_v7 = vrot.slane %v2150_v2, %v2816_v15 }
 0x165   :  { %v2638_v23 = vadd.f32 %v2637_v45, %v2636_v39  ;;  %v2669_v45 = vsel %vm2395_vm0, %v2148_v14, 0.0 }
 0x166   :  { %v2166_v17 = vcombine.high %v2164_v7, %v2164_v7 }
 0x167   :  { %v2640_v8 = vadd.f32 %v2639_v49, %v2638_v23  ;;  %v2671_v49 = vsel %vm2395_vm0, %v2147_v38, 0.0 }
 0x169   :  { %v2642_v56 = vadd.f32 %v2641_v3, %v2640_v8  ;;  %v2165_v3 = vcombine.high %v2157_v33, %v2157_v33  ;;  %v2673_v8 = vsel %vm2395_vm0, %v2149_v51, 0.0 }
 0x16b   :  { %v2644_v58 = vadd.f32 %v2643_v54, %v2642_v56  ;;  %v2675_v56 = vsel %vm2395_vm0, %v2157_v33, 0.0  ;;  %v2677_v25 = vsel %vm2395_vm0, %v2165_v3, 0.0 }
 0x16d   :  { %v2646_v16 = vadd.f32 %v2645_v29, %v2644_v58  ;;  %v2174_v29 = vrot.slane %v1511_v59, %v2816_v15  ;;  %v72_v58 = vld [vmem:[#allocation2 + $0x128] sm:$0xff] }
 0x16e   :  { %v1512_v11 = vmul.f32 %v4042_v50, %v72_v58 }
 0x16f   :  { %v2648_v61 = vadd.f32 %v2647_v20, %v2646_v16  ;;  %v2679_v16 = vsel %vm2395_vm0, %v2164_v7, 0.0 }
 0x170   :  { %v2184_v19 = vcombine.high %v1512_v11, %v1512_v11 }
 0x171   :  { %v2650_v52 = vadd.f32 %v2649_v4, %v2648_v61  ;;  %v2182_v4 = vcombine.high %v2174_v29, %v2174_v29  ;;  %v2681_v61 = vsel %vm2395_vm0, %v2166_v17, 0.0 }
 0x172   :  { %v2198_v35 = vrot.slane %v2184_v19, %v2816_v15 }
 0x173   :  { %v2652_v41 = vadd.f32 %v2651_v47, %v2650_v52  ;;  %v2683_v52 = vsel %vm2395_vm0, %v2174_v29, 0.0  ;;  %v2685_v57 = vsel %vm2395_vm0, %v2182_v4, 0.0 }
 0x174   :  { %v2200_v43 = vcombine.high %v2198_v35, %v2198_v35 }
 0x175   :  { %v2654_v55 = vadd.f32 %v2653_v21, %v2652_v41  ;;  %v2191_v21 = vrot.slane %v1512_v11, %v2816_v15  ;;  %v73_v41 = vld [vmem:[#allocation2 + $0x130] sm:$0xff] }
 0x176   :  { %v1513_v1 = vmul.f32 %v4043_v42, %v73_v41 }
 0x177   :  { %v2656_v30 = vadd.f32 %v2655_v27, %v2654_v55  ;;  %v2687_v55 = vsel %vm2395_vm0, %v2181_v63, 0.0 }
 0x178   :  { %v2201_v12 = vcombine.high %v1513_v1, %v1513_v1 }
 0x179   :  { %v2658_v10 = vadd.f32 %v2657_v22, %v2656_v30  ;;  %v2199_v22 = vcombine.high %v2191_v21, %v2191_v21  ;;  %v2689_v30 = vsel %vm2395_vm0, %v2183_v5, 0.0 }
 0x17a   :  { %v2215_v14 = vrot.slane %v2201_v12, %v2816_v15 }
 0x17b   :  { %v2660_v13 = vadd.f32 %v2659_v18, %v2658_v10  ;;  %v2691_v10 = vsel %vm2395_vm0, %v2191_v21, 0.0  ;;  %v2693_v31 = vsel %vm2395_vm0, %v2199_v22, 0.0 }
 0x17c   :  { %v2217_v2 = vcombine.high %v2215_v14, %v2215_v14 }
 0x17d   :  { %v2662_v26 = vadd.f32 %v2661_v0, %v2660_v13  ;;  %v2208_v0 = vrot.slane %v1513_v1, %v2816_v15  ;;  %v74_v13 = vld [vmem:[#allocation2 + $0x138] sm:$0xff] }
 0x17e   :  { %v1514_v38 = vmul.f32 %v4044_v37, %v74_v13  ;;  %v2705_v7 = vsel %vm2395_vm0, %v2217_v2, 0.0 }
 0x17f   :  { %v2664_v32 = vadd.f32 %v2663_v36, %v2662_v26  ;;  %v2695_v26 = vsel %vm2395_vm0, %v2198_v35, 0.0 }
 0x180   :  { %v2218_v33 = vcombine.high %v1514_v38, %v1514_v38 }
 0x181   :  { %v2666_v53 = vadd.f32 %v2665_v46, %v2664_v32  ;;  %v2216_v46 = vcombine.high %v2208_v0, %v2208_v0  ;;  %v2697_v32 = vsel %vm2395_vm0, %v2200_v43, 0.0 }
 0x182   :  { %v2232_v6 = vrot.slane %v2218_v33, %v2816_v15 }
 0x183   :  { %v2668_v39 = vadd.f32 %v2667_v62, %v2666_v53  ;;  %v2699_v53 = vsel %vm2395_vm0, %v2208_v0, 0.0  ;;  %v2701_v60 = vsel %vm2395_vm0, %v2216_v46, 0.0 }
 0x184   :  { %v2711_v9 = vsel %vm2395_vm0, %v2232_v6, 0.0 }
 0x185   :  { %v2670_v23 = vadd.f32 %v2669_v45, %v2668_v39  ;;  %v2225_v45 = vrot.slane %v1514_v38, %v2816_v15 }
 0x187   :  { %v2672_v54 = vadd.f32 %v2671_v49, %v2670_v23  ;;  %v2703_v49 = vsel %vm2395_vm0, %v2215_v14, 0.0  ;;  %v2233_v59 = vcombine.high %v2225_v45, %v2225_v45 }
 0x189   :  { %v2674_v44 = vadd.f32 %v2673_v8, %v2672_v54  ;;  %v2707_v8 = vsel %vm2395_vm0, %v2225_v45, 0.0 }
 0x18b   :  { %v2676_v20 = vadd.f32 %v2675_v56, %v2674_v44  ;;  %v2234_v56 = vcombine.high %v2232_v6, %v2232_v6  ;;  %v2709_v44 = vsel %vm2395_vm0, %v2233_v59, 0.0 }
 0x18d   :  { %v2678_v24 = vadd.f32 %v2677_v25, %v2676_v20  ;;  %v2713_v25 = vsel %vm2395_vm0, %v2234_v56, 0.0 }
 0x18f   :  { %v2680_v47 = vadd.f32 %v2679_v16, %v2678_v24 }
 0x191   :  { %v2682_v40 = vadd.f32 %v2681_v61, %v2680_v47 }
 0x193   :  { %v2684_v27 = vadd.f32 %v2683_v52, %v2682_v40 }
 0x195   :  { %v2686_v34 = vadd.f32 %v2685_v57, %v2684_v27 }
 0x197   :  { %v2688_v18 = vadd.f32 %v2687_v55, %v2686_v34 }
 0x199   :  { %v2690_v28 = vadd.f32 %v2689_v30, %v2688_v18 }
 0x19b   :  { %v2692_v36 = vadd.f32 %v2691_v10, %v2690_v28 }
 0x19d   :  { %v2694_v48 = vadd.f32 %v2693_v31, %v2692_v36 }
 0x19f   :  { %v2696_v62 = vadd.f32 %v2695_v26, %v2694_v48 }
 0x1a1   :  { %v2698_v51 = vadd.f32 %v2697_v32, %v2696_v62 }
 0x1a3   :  { %v2700_v39 = vadd.f32 %v2699_v53, %v2698_v51 }
 0x1a5   :  { %v2702_v23 = vadd.f32 %v2701_v60, %v2700_v39 }
 0x1a7   :  { %v2704_v3 = vadd.f32 %v2703_v49, %v2702_v23 }
 0x1a9   :  { %v2706_v54 = vadd.f32 %v2705_v7, %v2704_v3 }
 0x1ab   :  { %v2708_v17 = vadd.f32 %v2707_v8, %v2706_v54 }
 0x1ad   :  { %v2710_v29 = vadd.f32 %v2709_v44, %v2708_v17 }
 0x1af   :  { %v2712_v58 = vadd.f32 %v2711_v9, %v2710_v29 }
 0x1b1   :  { %v2714_v20 = vadd.f32 %v2713_v25, %v2712_v58 }
 0x1b3   :  { %2715 = vadd.xlane.f32.xlu0 %v2714_v20 }
 0x23c   :  { %v2716_v15 = vpop.xlane.xlu0 %2715 }
 0x23d   :  { %2718 = vst.msk [vmem:[%s3939_s2] sm:$0x3] %vm2717_vm1, %v2716_v15 }
 0x23e   :  { %2723 = vsyncpa [#allocation3], 1 }
 0x23f   :  { %2724 = vsyncpa [#allocation5], 1 }

</bundles_post_ra>
